<compile_context>
chip_gen: v7x
topology: tpu7x:2x2x1
jax: 0.10.0
libtpu: 0.0.40
codegen_flags: <defaults>
</compile_context>

<pallas_src>
import numpy as np
import jax
import jax.numpy as jnp
from jax import lax
from jax.experimental import pallas as pl
from jax.experimental.pallas import tpu as pltpu


# --------------------------------------------------------------------------- #
# Main kernel: one (direction, time-chunk) grid step of the packed bi-LSTM.    #
# --------------------------------------------------------------------------- #
def _bilstm_kernel(x_ref, lens_ref, wih_ref, whh_ref, b_ref,
                   out_ref, hn_ref, cn_ref, gx_ref):
    """Grid = (2 directions, nc time-chunks).

    x_ref    : (tc, Bp, E)  bf16  time-chunk of time-major embeddings
    lens_ref : (Bp, 1)      int32 per-row sequence lengths (0 for padded rows)
    wih_ref  : (E, 4D)      bf16  this direction's input weights, gates [i,f,o,g]
    whh_ref  : (D, 4D)      bf16  recurrent weights
    b_ref    : (1, 4D)      f32   b_ih + b_hh
    out_ref  : (tc, Bp, D)  f32   this direction's hidden per step (padding zeroed)
    hn_ref   : (Bp, D)      f32   final hidden (resident accumulator across chunks)
    cn_ref   : (Bp, D)      f32   final cell
    gx_ref   : (tc, Bp, 4D) f32   VMEM scratch (per-chunk input projection)
    """
    tc, Bp, E = x_ref.shape
    D = whh_ref.shape[0]

    d = pl.program_id(0)                       # 0 = forward, 1 = backward
    ci = pl.program_id(1)                      # chunk counter for this direction
    nc = pl.num_programs(1)
    chunk = ci + d * (nc - 1 - 2 * ci)         # fwd: ci, bwd: nc - 1 - ci
    base = chunk * tc                          # global time of local index 0

    # Zero-init the resident state at the first chunk of each direction.
    @pl.when(ci == 0)
    def _():
        hn_ref[...] = jnp.zeros_like(hn_ref)
        cn_ref[...] = jnp.zeros_like(cn_ref)

    # Hoisted per-chunk input projection: one MXU matmul for all tc steps.
    x_all = x_ref[...].reshape(tc * Bp, E)
    gx = jnp.dot(x_all, wih_ref[...], preferred_element_type=jnp.float32)
    gx = gx + b_ref[...]
    gx_ref[...] = gx.reshape(tc, Bp, 4 * D)

    whh = whh_ref[...]
    lens = lens_ref[...]                       # (Bp, 1) int32

    def step(j, carry):
        h, c = carry
        lj = j + d * (tc - 1 - 2 * j)          # fwd: j, bwd: tc - 1 - j
        g = base + lj                          # global time step
        gates = gx_ref[lj] + jnp.dot(h.astype(jnp.bfloat16), whh,
                                     preferred_element_type=jnp.float32)
        # Gate column order is [i, f, o, g]: one sigmoid slab + one tanh.
        sig = jax.nn.sigmoid(gates[:, 0:3 * D])
        g_gate = jnp.tanh(gates[:, 3 * D:4 * D])
        i_gate = sig[:, 0:D]
        f_gate = sig[:, D:2 * D]
        o_gate = sig[:, 2 * D:3 * D]
        c_new = f_gate * c + i_gate * g_gate
        h_new = o_gate * jnp.tanh(c_new)

        m = lens > g                           # packed-sequence validity mask
        out_ref[lj] = jnp.where(m, h_new, 0.0)  # pad_packed: padding -> zeros
        h = jnp.where(m, h_new, h)             # state frozen past each row's length
        c = jnp.where(m, c_new, c)
        return h, c

    h, c = lax.fori_loop(0, tc, step, (hn_ref[...], cn_ref[...]),
                         unroll=min(8, tc))
    hn_ref[...] = h
    cn_ref[...] = c


# --------------------------------------------------------------------------- #
# Tail kernel: reduce_h / reduce_c on hidden.view(1, B, 2D).                   #
# --------------------------------------------------------------------------- #
def _reduce_kernel(hn_ref, cn_ref, sel_ref, wrh_ref, brh_ref, wrc_ref, brc_ref,
                   hred_ref, cred_ref):
    """hn/cn: (2, Bp, D) finals; sel: (2, 2, Bp, Bp) one-hot permutation selectors
    reproducing PyTorch's direction-major hidden.view(1, B, 2D) interleaving;
    wrh/wrc: (2, D, D) = reduce weights (W^T split into its two D-row halves)."""
    h_f = hn_ref[0].astype(jnp.bfloat16)
    h_b = hn_ref[1].astype(jnp.bfloat16)
    c_f = cn_ref[0].astype(jnp.bfloat16)
    c_b = cn_ref[1].astype(jnp.bfloat16)

    sel_ef = sel_ref[0, 0]
    sel_eb = sel_ref[0, 1]
    sel_of = sel_ref[1, 0]
    sel_ob = sel_ref[1, 1]

    def interleave(a_f, a_b):
        even = (jnp.dot(sel_ef, a_f, preferred_element_type=jnp.float32)
                + jnp.dot(sel_eb, a_b, preferred_element_type=jnp.float32))
        odd = (jnp.dot(sel_of, a_f, preferred_element_type=jnp.float32)
               + jnp.dot(sel_ob, a_b, preferred_element_type=jnp.float32))
        return even.astype(jnp.bfloat16), odd.astype(jnp.bfloat16)

    h_even, h_odd = interleave(h_f, h_b)
    c_even, c_odd = interleave(c_f, c_b)

    hred_ref[...] = (jnp.dot(h_even, wrh_ref[0], preferred_element_type=jnp.float32)
                     + jnp.dot(h_odd, wrh_ref[1], preferred_element_type=jnp.float32)
                     + brh_ref[...])
    cred_ref[...] = (jnp.dot(c_even, wrc_ref[0], preferred_element_type=jnp.float32)
                     + jnp.dot(c_odd, wrc_ref[1], preferred_element_type=jnp.float32)
                     + brc_ref[...])


# --------------------------------------------------------------------------- #
# Parameter construction / preparation                                         #
# --------------------------------------------------------------------------- #
def init_params(key, vocab_size, embed_dim, hidden_dim):
    keys = jax.random.split(key, 14)
    k = 1.0 / np.sqrt(hidden_dim)

    def u(kk, shape):
        return jax.random.uniform(kk, shape, jnp.float32, -k, k)

    return {
        "embedding": jax.random.normal(keys[0], (vocab_size, embed_dim), jnp.float32),
        # forward direction (transposed, PyTorch gate order [i, f, g, o])
        "wih_f": u(keys[1], (embed_dim, 4 * hidden_dim)),
        "whh_f": u(keys[2], (hidden_dim, 4 * hidden_dim)),
        "b_f": u(keys[3], (1, 4 * hidden_dim)) + u(keys[4], (1, 4 * hidden_dim)),
        # backward direction
        "wih_b": u(keys[5], (embed_dim, 4 * hidden_dim)),
        "whh_b": u(keys[6], (hidden_dim, 4 * hidden_dim)),
        "b_b": u(keys[7], (1, 4 * hidden_dim)) + u(keys[8], (1, 4 * hidden_dim)),
        # reduce_h / reduce_c (stored as (2D, D), i.e. W^T)
        "w_reduce_h": u(keys[9], (2 * hidden_dim, hidden_dim)),
        "b_reduce_h": u(keys[10], (1, hidden_dim)),
        "w_reduce_c": u(keys[11], (2 * hidden_dim, hidden_dim)),
        "b_reduce_c": u(keys[12], (1, hidden_dim)),
    }


def prepare_params(params):
    """One-time weight prep (call once, reuse): stack directions, reorder gate
    columns [i,f,g,o] -> [i,f,o,g], cast matmul operands to bf16."""
    D = params["whh_f"].shape[0]

    def reorder(w):  # [i, f, g, o] -> [i, f, o, g] along the 4D axis
        return jnp.concatenate(
            [w[..., 0:2 * D], w[..., 3 * D:4 * D], w[..., 2 * D:3 * D]], axis=-1)

    wih = jnp.stack([reorder(params["wih_f"]),
                     reorder(params["wih_b"])]).astype(jnp.bfloat16)   # (2, E, 4D)
    whh = jnp.stack([reorder(params["whh_f"]),
                     reorder(params["whh_b"])]).astype(jnp.bfloat16)   # (2, D, 4D)
    b = jnp.stack([reorder(params["b_f"]),
                   reorder(params["b_b"])]).astype(jnp.float32)        # (2, 1, 4D)
    return {
        "embedding": params["embedding"],
        "wih": wih, "whh": whh, "b": b,
        "wrh": params["w_reduce_h"].reshape(2, D, D).astype(jnp.bfloat16),
        "brh": params["b_reduce_h"].astype(jnp.float32),
        "wrc": params["w_reduce_c"].reshape(2, D, D).astype(jnp.bfloat16),
        "brc": params["b_reduce_c"].astype(jnp.float32),
        "hidden_dim": D,
    }


def _build_selectors(B, Bp):
    """One-hot selectors so that view-row r = [block_{2r} | block_{2r+1}] where
    block_k = h_fwd[k] if k < B else h_bwd[k-B] (PyTorch's .view(1, B, 2D))."""
    sel = np.zeros((2, 2, Bp, Bp), np.float32)
    for r in range(B):
        for half in (0, 1):                    # 0: left D columns, 1: right D columns
            k = 2 * r + half
            if k < B:
                sel[half, 0, r, k] = 1.0       # from the forward final state
            else:
                sel[half, 1, r, k - B] = 1.0   # from the backward final state
    return sel


# --------------------------------------------------------------------------- #
# Forward wrapper                                                              #
# --------------------------------------------------------------------------- #
def encoder_forward(prep, _input, seq_lens, *, time_chunk=32):
    """_input: (B, T) int32 token ids.  seq_lens: HOST-side (numpy) lengths, like
    pack_padded_sequence -- output length is data-dependent, so do not trace it."""
    B, T = _input.shape
    D = prep["hidden_dim"]
    E = prep["embedding"].shape[1]
    Bp = ((B + 7) // 8) * 8                               # pad batch to f32 sublane
    tc = max(1, min(int(time_chunk), T))                  # time-chunk size
    Tp = ((T + tc - 1) // tc) * tc
    nc = Tp // tc

    # Embedding lookup (XLA glue) -> time-major, padded, bf16 for the MXU.
    embedded = jnp.take(prep["embedding"], _input, axis=0)           # (B, T, E)
    x = jnp.transpose(embedded, (1, 0, 2))                           # (T, B, E)
    x = jnp.pad(x, ((0, Tp - T), (0, Bp - B), (0, 0))).astype(jnp.bfloat16)

    seq_lens_np = np.asarray(seq_lens, dtype=np.int32)
    lens_np = np.zeros((Bp, 1), np.int32)
    lens_np[:B, 0] = seq_lens_np
    lens = jnp.asarray(lens_np)

    def chunk_map(d, ci):                                  # fwd: ci, bwd: nc-1-ci
        return ci + d * (nc - 1 - 2 * ci)

    lane_dense = (D % 128 == 0)
    if lane_dense:
        # One combined lane-dense output: fwd -> lanes [0:D], bwd -> [D:2D].
        out_sds = jax.ShapeDtypeStruct((Tp, Bp, 2 * D), jnp.float32)
        out_spec = pl.BlockSpec((tc, Bp, D), lambda d, ci: (chunk_map(d, ci), 0, d))
    else:
        # TODO(synk): lane-dense combined output needs D % 128 == 0; fallback keeps
        # a per-direction layout and pays one XLA interleave pass instead.
        out_sds = jax.ShapeDtypeStruct((2, Tp, Bp, D), jnp.float32)
        out_spec = pl.BlockSpec((None, tc, Bp, D),
                                lambda d, ci: (d, chunk_map(d, ci), 0, 0))

    # VMEM budget: double-buffered blocks + gx scratch with headroom, capped at
    # 64 MiB so the same setting is legal on v7x (64 MiB/TC) as well as v5e/v6e.
    block_bytes = (tc * Bp * E * 2 + E * 4 * D * 2 + D * 4 * D * 2 + 4 * D * 4
                   + Bp * 4 + tc * Bp * D * 4 + 2 * Bp * D * 4)
    vmem_limit = int(min(max(4 * block_bytes + tc * Bp * 4 * D * 4, 16 << 20),
                         64 << 20))

    out, hn, cn = pl.pallas_call(
        _bilstm_kernel,
        grid=(2, nc),
        out_shape=(out_sds,
                   jax.ShapeDtypeStruct((2, Bp, D), jnp.float32),
                   jax.ShapeDtypeStruct((2, Bp, D), jnp.float32)),
        in_specs=[
            pl.BlockSpec((tc, Bp, E), lambda d, ci: (chunk_map(d, ci), 0, 0)),
            pl.BlockSpec((Bp, 1), lambda d, ci: (0, 0)),
            pl.BlockSpec((None, E, 4 * D), lambda d, ci: (d, 0, 0)),
            pl.BlockSpec((None, D, 4 * D), lambda d, ci: (d, 0, 0)),
            pl.BlockSpec((None, 1, 4 * D), lambda d, ci: (d, 0, 0)),
        ],
        out_specs=(out_spec,
                   pl.BlockSpec((None, Bp, D), lambda d, ci: (d, 0, 0)),
                   pl.BlockSpec((None, Bp, D), lambda d, ci: (d, 0, 0))),
        scratch_shapes=[pltpu.VMEM((tc, Bp, 4 * D), jnp.float32)],
        compiler_params=pltpu.CompilerParams(
            # direction axis "parallel": on megacore parts (v7x) the two
            # independent recurrences split across the two TensorCores.
            dimension_semantics=("parallel", "arbitrary"),
            vmem_limit_bytes=vmem_limit),
    )(x, lens, prep["wih"], prep["whh"], prep["b"])

    # Fused reduce_h / reduce_c on hidden.view(1, B, 2D) (tiny tail kernel).
    sel = jnp.asarray(_build_selectors(B, Bp), dtype=jnp.bfloat16)
    vmem = pl.BlockSpec(memory_space=pltpu.MemorySpace.VMEM)
    h_red, c_red = pl.pallas_call(
        _reduce_kernel,
        out_shape=(jax.ShapeDtypeStruct((Bp, D), jnp.float32),
                   jax.ShapeDtypeStruct((Bp, D), jnp.float32)),
        in_specs=[vmem] * 7,
        out_specs=(vmem, vmem),
    )(hn, cn, sel, prep["wrh"], prep["brh"], prep["wrc"], prep["brc"])

    # pad_packed_sequence(batch_first=True): (B, max(seq_lens), 2D), padding zeroed.
    T_out = int(seq_lens_np.max())
    if lane_dense:
        output = jnp.transpose(out, (1, 0, 2))[:B, :T_out, :]
    else:
        output = jnp.transpose(out, (2, 1, 0, 3)).reshape(Bp, Tp, 2 * D)[:B, :T_out, :]

    hidden = h_red[None, :B, :]                                     # (1, B, D)
    cell = c_red[None, :B, :]                                       # (1, B, D)
    return output, (hidden, cell)


# --------------------------------------------------------------------------- #
# Pure-JAX f32 reference (mirrors the PyTorch module) for correctness check.   #
# --------------------------------------------------------------------------- #
def encoder_reference(params, _input, seq_lens):
    B, T = _input.shape
    D = params["whh_f"].shape[0]
    emb = jnp.take(params["embedding"], _input, axis=0)             # (B, T, E)
    lens = jnp.asarray(np.asarray(seq_lens, np.int32))

    def lstm_dir(wih, whh, b, times):
        h = jnp.zeros((B, D), jnp.float32)
        c = jnp.zeros((B, D), jnp.float32)
        outs = [None] * T
        for t in times:
            gates = emb[:, t, :] @ wih + h @ whh + b
            i_g = jax.nn.sigmoid(gates[:, 0:D])
            f_g = jax.nn.sigmoid(gates[:, D:2 * D])
            g_g = jnp.tanh(gates[:, 2 * D:3 * D])
            o_g = jax.nn.sigmoid(gates[:, 3 * D:4 * D])
            c_new = f_g * c + i_g * g_g
            h_new = o_g * jnp.tanh(c_new)
            m = (lens > t)[:, None]
            outs[t] = jnp.where(m, h_new, 0.0)
            h = jnp.where(m, h_new, h)
            c = jnp.where(m, c_new, c)
        return h, c, jnp.stack(outs, axis=1)                        # (B, T, D)

    hf, cf, of = lstm_dir(params["wih_f"], params["whh_f"], params["b_f"], range(T))
    hb, cb, ob = lstm_dir(params["wih_b"], params["whh_b"], params["b_b"],
                          range(T - 1, -1, -1))

    T_out = int(np.asarray(seq_lens).max())
    out = jnp.concatenate([of, ob], axis=-1)[:, :T_out, :]
    hv = jnp.stack([hf, hb], axis=0).reshape(1, B, 2 * D)
    cv = jnp.stack([cf, cb], axis=0).reshape(1, B, 2 * D)
    hidden = hv @ params["w_reduce_h"] + params["b_reduce_h"]
    cell = cv @ params["w_reduce_c"] + params["b_reduce_c"]
    return out, (hidden, cell)


if __name__ == "__main__":
    vocab_size, embed_dim, hidden_dim = 48, 64, 128
    B, T = 3, 11

    key = jax.random.PRNGKey(0)
    pkey, ikey = jax.random.split(key)
    params = init_params(pkey, vocab_size, embed_dim, hidden_dim)
    prepared = prepare_params(params)          # fused/casted weights, built once

    _input = jax.random.randint(ikey, (B, T), 0, vocab_size, dtype=jnp.int32)
    seq_lens = np.array([11, 8, 5], dtype=np.int32)   # host-side, pack_padded style

    output, (hidden, cell) = encoder_forward(prepared, _input, seq_lens, time_chunk=4)
    jax.block_until_ready((output, hidden, cell))

    T_out = int(seq_lens.max())
    assert output.shape == (B, T_out, 2 * hidden_dim)
    assert hidden.shape == (1, B, hidden_dim)
    assert cell.shape == (1, B, hidden_dim)

    ref_out, (ref_h, ref_c) = encoder_reference(params, _input, seq_lens)
    np.testing.assert_allclose(np.asarray(output), np.asarray(ref_out), atol=0.1, rtol=0)
    np.testing.assert_allclose(np.asarray(hidden), np.asarray(ref_h), atol=0.1, rtol=0)
    np.testing.assert_allclose(np.asarray(cell), np.asarray(ref_c), atol=0.1, rtol=0)
    print("KERNEL_OK")
</pallas_src>

<mosaic_0001>
module attributes {stable_mosaic.version = 11 : i64} {
  func.func @_bilstm_kernel(%arg0: i32, %arg1: i32, %arg2: memref<4x8x64xbf16, #tpu.memory_space<vmem>>, %arg3: memref<8x1xi32, #tpu.memory_space<vmem>>, %arg4: memref<1x64x512xbf16, #tpu.memory_space<vmem>>, %arg5: memref<1x128x512xbf16, #tpu.memory_space<vmem>>, %arg6: memref<1x1x512xf32, #tpu.memory_space<vmem>>, %arg7: memref<4x8x128xf32, #tpu.memory_space<vmem>>, %arg8: memref<1x8x128xf32, #tpu.memory_space<vmem>>, %arg9: memref<1x8x128xf32, #tpu.memory_space<vmem>>, %arg10: memref<4x8x512xf32, #tpu.memory_space<vmem>>) attributes {dimension_semantics = [#tpu.dimension_semantics<parallel>, #tpu.dimension_semantics<arbitrary>], iteration_bounds = array<i64: 2, 3>, scalar_prefetch = 0 : i64, scratch_operands = 1 : i64, tpu.core_type = #tpu.core_type<tc>, window_params = [{transform_indices = @transform_0, window_bounds = array<i64: 4, 8, 64>}, {pipeline_mode = #tpu.pipeline_mode<synchronous>, transform_indices = @transform_1, window_bounds = array<i64: 8, 1>}, {transform_indices = @transform_2, window_bounds = array<i64: 1, 64, 512>}, {transform_indices = @transform_3, window_bounds = array<i64: 1, 128, 512>}, {transform_indices = @transform_4, window_bounds = array<i64: 1, 1, 512>}, {transform_indices = @transform_5, window_bounds = array<i64: 4, 8, 128>}, {transform_indices = @transform_6, window_bounds = array<i64: 1, 8, 128>}, {transform_indices = @transform_7, window_bounds = array<i64: 1, 8, 128>}]} {
    %c2_i32 = arith.constant 2 : i32
    %0 = arith.muli %c2_i32, %arg1 : i32
    %c2_i32_0 = arith.constant 2 : i32
    %1 = arith.subi %c2_i32_0, %0 : i32
    %2 = arith.muli %arg0, %1 : i32
    %3 = arith.addi %arg1, %2 : i32
    %c4_i32 = arith.constant 4 : i32
    %4 = arith.muli %3, %c4_i32 : i32
    %c0_i32 = arith.constant 0 : i32
    %5 = arith.cmpi eq, %arg1, %c0_i32 : i32
    %6 = arith.extui %5 : i1 to i32
    %c0_i32_1 = arith.constant 0 : i32
    %7 = arith.cmpi ne, %6, %c0_i32_1 : i32
    scf.if %7 {
      %cst_69 = arith.constant 0.000000e+00 : f32
      %204 = vector.broadcast %cst_69 : f32 to vector<8x128xf32>
      %c0_70 = arith.constant 0 : index
      %c0_71 = arith.constant 0 : index
      %c0_72 = arith.constant 0 : index
      %205 = vector.load %arg8[%c0_70, %c0_71, %c0_72] : memref<1x8x128xf32, #tpu.memory_space<vmem>>, vector<1x8x128xf32>
      %206 = vector.shape_cast %205 : vector<1x8x128xf32> to vector<8x128xf32>
      %207 = vector.shape_cast %204 : vector<8x128xf32> to vector<1x8x128xf32>
      tpu.vector_store %arg8[%c0_70, %c0_71, %c0_72], %207 {strides = array<i32>} : memref<1x8x128xf32, #tpu.memory_space<vmem>>, vector<1x8x128xf32>,
      %cst_73 = arith.constant 0.000000e+00 : f32
      %208 = vector.broadcast %cst_73 : f32 to vector<8x128xf32>
      %c0_74 = arith.constant 0 : index
      %c0_75 = arith.constant 0 : index
      %c0_76 = arith.constant 0 : index
      %209 = vector.load %arg9[%c0_74, %c0_75, %c0_76] : memref<1x8x128xf32, #tpu.memory_space<vmem>>, vector<1x8x128xf32>
      %210 = vector.shape_cast %209 : vector<1x8x128xf32> to vector<8x128xf32>
      %211 = vector.shape_cast %208 : vector<8x128xf32> to vector<1x8x128xf32>
      tpu.vector_store %arg9[%c0_74, %c0_75, %c0_76], %211 {strides = array<i32>} : memref<1x8x128xf32, #tpu.memory_space<vmem>>, vector<1x8x128xf32>,
    } else {
    }
    %c0 = arith.constant 0 : index
    %c0_2 = arith.constant 0 : index
    %c0_3 = arith.constant 0 : index
    %8 = vector.load %arg2[%c0, %c0_2, %c0_3] : memref<4x8x64xbf16, #tpu.memory_space<vmem>>, vector<4x8x64xbf16>
    %9 = vector.shape_cast %8 : vector<4x8x64xbf16> to vector<32x64xbf16>
    %c0_4 = arith.constant 0 : index
    %c0_5 = arith.constant 0 : index
    %c0_6 = arith.constant 0 : index
    %10 = vector.load %arg4[%c0_4, %c0_5, %c0_6] : memref<1x64x512xbf16, #tpu.memory_space<vmem>>, vector<1x64x512xbf16>
    %11 = vector.shape_cast %10 : vector<1x64x512xbf16> to vector<64x512xbf16>
    %cst = arith.constant dense<0.000000e+00> : vector<32x512xf32>
    %12 = tpu.matmul %9, %11, %cst {dimension_numbers = #tpu.dot_dimension_numbers<[1], [0], [0], [1], [0, 0, 1, 1], [], []>} : vector<32x64xbf16>, vector<64x512xbf16>, vector<32x512xf32> -> vector<32x512xf32>
    %c0_7 = arith.constant 0 : index
    %c0_8 = arith.constant 0 : index
    %c0_9 = arith.constant 0 : index
    %13 = vector.load %arg6[%c0_7, %c0_8, %c0_9] : memref<1x1x512xf32, #tpu.memory_space<vmem>>, vector<1x1x512xf32>
    %14 = vector.shape_cast %13 : vector<1x1x512xf32> to vector<1x512xf32>
    %15 = vector.broadcast %14 : vector<1x512xf32> to vector<32x512xf32>
    %16 = arith.addf %12, %15 : vector<32x512xf32>
    %17 = vector.shape_cast %16 : vector<32x512xf32> to vector<4x8x512xf32>
    %c0_10 = arith.constant 0 : index
    %c0_11 = arith.constant 0 : index
    %c0_12 = arith.constant 0 : index
    %18 = vector.load %arg10[%c0_10, %c0_11, %c0_12] : memref<4x8x512xf32, #tpu.memory_space<vmem>>, vector<4x8x512xf32>
    tpu.vector_store %arg10[%c0_10, %c0_11, %c0_12], %17 {strides = array<i32>} : memref<4x8x512xf32, #tpu.memory_space<vmem>>, vector<4x8x512xf32>,
    %c0_13 = arith.constant 0 : index
    %c0_14 = arith.constant 0 : index
    %c0_15 = arith.constant 0 : index
    %19 = vector.load %arg5[%c0_13, %c0_14, %c0_15] : memref<1x128x512xbf16, #tpu.memory_space<vmem>>, vector<1x128x512xbf16>
    %20 = vector.shape_cast %19 : vector<1x128x512xbf16> to vector<128x512xbf16>
    %c0_16 = arith.constant 0 : index
    %c0_17 = arith.constant 0 : index
    %21 = vector.load %arg3[%c0_16, %c0_17] : memref<8x1xi32, #tpu.memory_space<vmem>>, vector<8x1xi32>
    %c0_18 = arith.constant 0 : index
    %c0_19 = arith.constant 0 : index
    %c0_20 = arith.constant 0 : index
    %22 = vector.load %arg8[%c0_18, %c0_19, %c0_20] : memref<1x8x128xf32, #tpu.memory_space<vmem>>, vector<1x8x128xf32>
    %23 = vector.shape_cast %22 : vector<1x8x128xf32> to vector<8x128xf32>
    %c0_21 = arith.constant 0 : index
    %c0_22 = arith.constant 0 : index
    %c0_23 = arith.constant 0 : index
    %24 = vector.load %arg9[%c0_21, %c0_22, %c0_23] : memref<1x8x128xf32, #tpu.memory_space<vmem>>, vector<1x8x128xf32>
    %25 = vector.shape_cast %24 : vector<1x8x128xf32> to vector<8x128xf32>
    %c0_i32_24 = arith.constant 0 : i32
    %c2_i32_25 = arith.constant 2 : i32
    %26 = arith.muli %c2_i32_25, %c0_i32_24 : i32
    %c3_i32 = arith.constant 3 : i32
    %27 = arith.subi %c3_i32, %26 : i32
    %28 = arith.muli %arg0, %27 : i32
    %29 = arith.addi %c0_i32_24, %28 : i32
    %30 = arith.addi %4, %29 : i32
    %31 = arith.index_cast %29 : i32 to index
    %c0_26 = arith.constant 0 : index
    %c0_27 = arith.constant 0 : index
    %32 = vector.load %arg10[%31, %c0_26, %c0_27] : memref<4x8x512xf32, #tpu.memory_space<vmem>>, vector<1x8x512xf32>
    %33 = vector.shape_cast %32 : vector<1x8x512xf32> to vector<8x512xf32>
    %34 = arith.truncf %23 : vector<8x128xf32> to vector<8x128xbf16>
    %cst_28 = arith.constant dense<0.000000e+00> : vector<8x512xf32>
    %35 = tpu.matmul %34, %20, %cst_28 {dimension_numbers = #tpu.dot_dimension_numbers<[1], [0], [0], [1], [0, 0, 1, 1], [], []>} : vector<8x128xbf16>, vector<128x512xbf16>, vector<8x512xf32> -> vector<8x512xf32>
    %36 = arith.addf %33, %35 : vector<8x512xf32>
    %37 = vector.extract_strided_slice %36 {offsets = [0, 0], sizes = [8, 384], strides = [1, 1]} : vector<8x512xf32> to vector<8x384xf32>
    %38 = arith.negf %37 : vector<8x384xf32>
    %39 = math.exp %38 : vector<8x384xf32>
    %cst_29 = arith.constant 1.000000e+00 : f32
    %40 = vector.broadcast %cst_29 : f32 to vector<8x384xf32>
    %41 = arith.addf %40, %39 : vector<8x384xf32>
    %42 = arith.divf %40, %41 : vector<8x384xf32>
    %43 = vector.extract_strided_slice %36 {offsets = [0, 384], sizes = [8, 128], strides = [1, 1]} : vector<8x512xf32> to vector<8x128xf32>
    %44 = math.tanh %43 : vector<8x128xf32>
    %45 = vector.extract_strided_slice %42 {offsets = [0, 0], sizes = [8, 128], strides = [1, 1]} : vector<8x384xf32> to vector<8x128xf32>
    %46 = vector.extract_strided_slice %42 {offsets = [0, 128], sizes = [8, 128], strides = [1, 1]} : vector<8x384xf32> to vector<8x128xf32>
    %47 = vector.extract_strided_slice %42 {offsets = [0, 256], sizes = [8, 128], strides = [1, 1]} : vector<8x384xf32> to vector<8x128xf32>
    %48 = arith.mulf %46, %25 : vector<8x128xf32>
    %49 = arith.mulf %45, %44 : vector<8x128xf32>
    %50 = arith.addf %48, %49 : vector<8x128xf32>
    %51 = math.tanh %50 : vector<8x128xf32>
    %52 = arith.mulf %47, %51 : vector<8x128xf32>
    %53 = vector.broadcast %30 : i32 to vector<8x1xi32>
    %54 = arith.cmpi sgt, %21, %53 : vector<8x1xi32>
    %cst_30 = arith.constant 0.000000e+00 : f32
    %55 = vector.shape_cast %54 : vector<8x1xi1> to vector<8x1xi1>
    %56 = vector.broadcast %55 : vector<8x1xi1> to vector<8x128xi1>
    %57 = vector.broadcast %cst_30 : f32 to vector<8x128xf32>
    %58 = arith.select %56, %52, %57 : vector<8x128xi1>, vector<8x128xf32>
    %59 = arith.index_cast %29 : i32 to index
    %c0_31 = arith.constant 0 : index
    %c0_32 = arith.constant 0 : index
    %60 = vector.load %arg7[%59, %c0_31, %c0_32] : memref<4x8x128xf32, #tpu.memory_space<vmem>>, vector<1x8x128xf32>
    %61 = vector.shape_cast %60 : vector<1x8x128xf32> to vector<8x128xf32>
    %62 = vector.shape_cast %58 : vector<8x128xf32> to vector<1x8x128xf32>
    tpu.vector_store %arg7[%59, %c0_31, %c0_32], %62 {strides = array<i32>} : memref<4x8x128xf32, #tpu.memory_space<vmem>>, vector<1x8x128xf32>,
    %63 = vector.shape_cast %54 : vector<8x1xi1> to vector<8x1xi1>
    %64 = vector.broadcast %63 : vector<8x1xi1> to vector<8x128xi1>
    %65 = arith.select %64, %52, %23 : vector<8x128xi1>, vector<8x128xf32>
    %66 = vector.shape_cast %54 : vector<8x1xi1> to vector<8x1xi1>
    %67 = vector.broadcast %66 : vector<8x1xi1> to vector<8x128xi1>
    %68 = arith.select %67, %50, %25 : vector<8x128xi1>, vector<8x128xf32>
    %c1_i32 = arith.constant 1 : i32
    %c2_i32_33 = arith.constant 2 : i32
    %69 = arith.muli %c2_i32_33, %c1_i32 : i32
    %c3_i32_34 = arith.constant 3 : i32
    %70 = arith.subi %c3_i32_34, %69 : i32
    %71 = arith.muli %arg0, %70 : i32
    %72 = arith.addi %c1_i32, %71 : i32
    %73 = arith.addi %4, %72 : i32
    %74 = arith.index_cast %72 : i32 to index
    %c0_35 = arith.constant 0 : index
    %c0_36 = arith.constant 0 : index
    %75 = vector.load %arg10[%74, %c0_35, %c0_36] : memref<4x8x512xf32, #tpu.memory_space<vmem>>, vector<1x8x512xf32>
    %76 = vector.shape_cast %75 : vector<1x8x512xf32> to vector<8x512xf32>
    %77 = arith.truncf %65 : vector<8x128xf32> to vector<8x128xbf16>
    %cst_37 = arith.constant dense<0.000000e+00> : vector<8x512xf32>
    %78 = tpu.matmul %77, %20, %cst_37 {dimension_numbers = #tpu.dot_dimension_numbers<[1], [0], [0], [1], [0, 0, 1, 1], [], []>} : vector<8x128xbf16>, vector<128x512xbf16>, vector<8x512xf32> -> vector<8x512xf32>
    %79 = arith.addf %76, %78 : vector<8x512xf32>
    %80 = vector.extract_strided_slice %79 {offsets = [0, 0], sizes = [8, 384], strides = [1, 1]} : vector<8x512xf32> to vector<8x384xf32>
    %81 = arith.negf %80 : vector<8x384xf32>
    %82 = math.exp %81 : vector<8x384xf32>
    %cst_38 = arith.constant 1.000000e+00 : f32
    %83 = vector.broadcast %cst_38 : f32 to vector<8x384xf32>
    %84 = arith.addf %83, %82 : vector<8x384xf32>
    %85 = arith.divf %83, %84 : vector<8x384xf32>
    %86 = vector.extract_strided_slice %79 {offsets = [0, 384], sizes = [8, 128], strides = [1, 1]} : vector<8x512xf32> to vector<8x128xf32>
    %87 = math.tanh %86 : vector<8x128xf32>
    %88 = vector.extract_strided_slice %85 {offsets = [0, 0], sizes = [8, 128], strides = [1, 1]} : vector<8x384xf32> to vector<8x128xf32>
    %89 = vector.extract_strided_slice %85 {offsets = [0, 128], sizes = [8, 128], strides = [1, 1]} : vector<8x384xf32> to vector<8x128xf32>
    %90 = vector.extract_strided_slice %85 {offsets = [0, 256], sizes = [8, 128], strides = [1, 1]} : vector<8x384xf32> to vector<8x128xf32>
    %91 = arith.mulf %89, %68 : vector<8x128xf32>
    %92 = arith.mulf %88, %87 : vector<8x128xf32>
    %93 = arith.addf %91, %92 : vector<8x128xf32>
    %94 = math.tanh %93 : vector<8x128xf32>
    %95 = arith.mulf %90, %94 : vector<8x128xf32>
    %96 = vector.broadcast %73 : i32 to vector<8x1xi32>
    %97 = arith.cmpi sgt, %21, %96 : vector<8x1xi32>
    %cst_39 = arith.constant 0.000000e+00 : f32
    %98 = vector.shape_cast %97 : vector<8x1xi1> to vector<8x1xi1>
    %99 = vector.broadcast %98 : vector<8x1xi1> to vector<8x128xi1>
    %100 = vector.broadcast %cst_39 : f32 to vector<8x128xf32>
    %101 = arith.select %99, %95, %100 : vector<8x128xi1>, vector<8x128xf32>
    %102 = arith.index_cast %72 : i32 to index
    %c0_40 = arith.constant 0 : index
    %c0_41 = arith.constant 0 : index
    %103 = vector.load %arg7[%102, %c0_40, %c0_41] : memref<4x8x128xf32, #tpu.memory_space<vmem>>, vector<1x8x128xf32>
    %104 = vector.shape_cast %103 : vector<1x8x128xf32> to vector<8x128xf32>
    %105 = vector.shape_cast %101 : vector<8x128xf32> to vector<1x8x128xf32>
    tpu.vector_store %arg7[%102, %c0_40, %c0_41], %105 {strides = array<i32>} : memref<4x8x128xf32, #tpu.memory_space<vmem>>, vector<1x8x128xf32>,
    %106 = vector.shape_cast %97 : vector<8x1xi1> to vector<8x1xi1>
    %107 = vector.broadcast %106 : vector<8x1xi1> to vector<8x128xi1>
    %108 = arith.select %107, %95, %65 : vector<8x128xi1>, vector<8x128xf32>
    %109 = vector.shape_cast %97 : vector<8x1xi1> to vector<8x1xi1>
    %110 = vector.broadcast %109 : vector<8x1xi1> to vector<8x128xi1>
    %111 = arith.select %110, %93, %68 : vector<8x128xi1>, vector<8x128xf32>
    %c2_i32_42 = arith.constant 2 : i32
    %c2_i32_43 = arith.constant 2 : i32
    %112 = arith.muli %c2_i32_43, %c2_i32_42 : i32
    %c3_i32_44 = arith.constant 3 : i32
    %113 = arith.subi %c3_i32_44, %112 : i32
    %114 = arith.muli %arg0, %113 : i32
    %115 = arith.addi %c2_i32_42, %114 : i32
    %116 = arith.addi %4, %115 : i32
    %117 = arith.index_cast %115 : i32 to index
    %c0_45 = arith.constant 0 : index
    %c0_46 = arith.constant 0 : index
    %118 = vector.load %arg10[%117, %c0_45, %c0_46] : memref<4x8x512xf32, #tpu.memory_space<vmem>>, vector<1x8x512xf32>
    %119 = vector.shape_cast %118 : vector<1x8x512xf32> to vector<8x512xf32>
    %120 = arith.truncf %108 : vector<8x128xf32> to vector<8x128xbf16>
    %cst_47 = arith.constant dense<0.000000e+00> : vector<8x512xf32>
    %121 = tpu.matmul %120, %20, %cst_47 {dimension_numbers = #tpu.dot_dimension_numbers<[1], [0], [0], [1], [0, 0, 1, 1], [], []>} : vector<8x128xbf16>, vector<128x512xbf16>, vector<8x512xf32> -> vector<8x512xf32>
    %122 = arith.addf %119, %121 : vector<8x512xf32>
    %123 = vector.extract_strided_slice %122 {offsets = [0, 0], sizes = [8, 384], strides = [1, 1]} : vector<8x512xf32> to vector<8x384xf32>
    %124 = arith.negf %123 : vector<8x384xf32>
    %125 = math.exp %124 : vector<8x384xf32>
    %cst_48 = arith.constant 1.000000e+00 : f32
    %126 = vector.broadcast %cst_48 : f32 to vector<8x384xf32>
    %127 = arith.addf %126, %125 : vector<8x384xf32>
    %128 = arith.divf %126, %127 : vector<8x384xf32>
    %129 = vector.extract_strided_slice %122 {offsets = [0, 384], sizes = [8, 128], strides = [1, 1]} : vector<8x512xf32> to vector<8x128xf32>
    %130 = math.tanh %129 : vector<8x128xf32>
    %131 = vector.extract_strided_slice %128 {offsets = [0, 0], sizes = [8, 128], strides = [1, 1]} : vector<8x384xf32> to vector<8x128xf32>
    %132 = vector.extract_strided_slice %128 {offsets = [0, 128], sizes = [8, 128], strides = [1, 1]} : vector<8x384xf32> to vector<8x128xf32>
    %133 = vector.extract_strided_slice %128 {offsets = [0, 256], sizes = [8, 128], strides = [1, 1]} : vector<8x384xf32> to vector<8x128xf32>
    %134 = arith.mulf %132, %111 : vector<8x128xf32>
    %135 = arith.mulf %131, %130 : vector<8x128xf32>
    %136 = arith.addf %134, %135 : vector<8x128xf32>
    %137 = math.tanh %136 : vector<8x128xf32>
    %138 = arith.mulf %133, %137 : vector<8x128xf32>
    %139 = vector.broadcast %116 : i32 to vector<8x1xi32>
    %140 = arith.cmpi sgt, %21, %139 : vector<8x1xi32>
    %cst_49 = arith.constant 0.000000e+00 : f32
    %141 = vector.shape_cast %140 : vector<8x1xi1> to vector<8x1xi1>
    %142 = vector.broadcast %141 : vector<8x1xi1> to vector<8x128xi1>
    %143 = vector.broadcast %cst_49 : f32 to vector<8x128xf32>
    %144 = arith.select %142, %138, %143 : vector<8x128xi1>, vector<8x128xf32>
    %145 = arith.index_cast %115 : i32 to index
    %c0_50 = arith.constant 0 : index
    %c0_51 = arith.constant 0 : index
    %146 = vector.load %arg7[%145, %c0_50, %c0_51] : memref<4x8x128xf32, #tpu.memory_space<vmem>>, vector<1x8x128xf32>
    %147 = vector.shape_cast %146 : vector<1x8x128xf32> to vector<8x128xf32>
    %148 = vector.shape_cast %144 : vector<8x128xf32> to vector<1x8x128xf32>
    tpu.vector_store %arg7[%145, %c0_50, %c0_51], %148 {strides = array<i32>} : memref<4x8x128xf32, #tpu.memory_space<vmem>>, vector<1x8x128xf32>,
    %149 = vector.shape_cast %140 : vector<8x1xi1> to vector<8x1xi1>
    %150 = vector.broadcast %149 : vector<8x1xi1> to vector<8x128xi1>
    %151 = arith.select %150, %138, %108 : vector<8x128xi1>, vector<8x128xf32>
    %152 = vector.shape_cast %140 : vector<8x1xi1> to vector<8x1xi1>
    %153 = vector.broadcast %152 : vector<8x1xi1> to vector<8x128xi1>
    %154 = arith.select %153, %136, %111 : vector<8x128xi1>, vector<8x128xf32>
    %c3_i32_52 = arith.constant 3 : i32
    %c2_i32_53 = arith.constant 2 : i32
    %155 = arith.muli %c2_i32_53, %c3_i32_52 : i32
    %c3_i32_54 = arith.constant 3 : i32
    %156 = arith.subi %c3_i32_54, %155 : i32
    %157 = arith.muli %arg0, %156 : i32
    %158 = arith.addi %c3_i32_52, %157 : i32
    %159 = arith.addi %4, %158 : i32
    %160 = arith.index_cast %158 : i32 to index
    %c0_55 = arith.constant 0 : index
    %c0_56 = arith.constant 0 : index
    %161 = vector.load %arg10[%160, %c0_55, %c0_56] : memref<4x8x512xf32, #tpu.memory_space<vmem>>, vector<1x8x512xf32>
    %162 = vector.shape_cast %161 : vector<1x8x512xf32> to vector<8x512xf32>
    %163 = arith.truncf %151 : vector<8x128xf32> to vector<8x128xbf16>
    %cst_57 = arith.constant dense<0.000000e+00> : vector<8x512xf32>
    %164 = tpu.matmul %163, %20, %cst_57 {dimension_numbers = #tpu.dot_dimension_numbers<[1], [0], [0], [1], [0, 0, 1, 1], [], []>} : vector<8x128xbf16>, vector<128x512xbf16>, vector<8x512xf32> -> vector<8x512xf32>
    %165 = arith.addf %162, %164 : vector<8x512xf32>
    %166 = vector.extract_strided_slice %165 {offsets = [0, 0], sizes = [8, 384], strides = [1, 1]} : vector<8x512xf32> to vector<8x384xf32>
    %167 = arith.negf %166 : vector<8x384xf32>
    %168 = math.exp %167 : vector<8x384xf32>
    %cst_58 = arith.constant 1.000000e+00 : f32
    %169 = vector.broadcast %cst_58 : f32 to vector<8x384xf32>
    %170 = arith.addf %169, %168 : vector<8x384xf32>
    %171 = arith.divf %169, %170 : vector<8x384xf32>
    %172 = vector.extract_strided_slice %165 {offsets = [0, 384], sizes = [8, 128], strides = [1, 1]} : vector<8x512xf32> to vector<8x128xf32>
    %173 = math.tanh %172 : vector<8x128xf32>
    %174 = vector.extract_strided_slice %171 {offsets = [0, 0], sizes = [8, 128], strides = [1, 1]} : vector<8x384xf32> to vector<8x128xf32>
    %175 = vector.extract_strided_slice %171 {offsets = [0, 128], sizes = [8, 128], strides = [1, 1]} : vector<8x384xf32> to vector<8x128xf32>
    %176 = vector.extract_strided_slice %171 {offsets = [0, 256], sizes = [8, 128], strides = [1, 1]} : vector<8x384xf32> to vector<8x128xf32>
    %177 = arith.mulf %175, %154 : vector<8x128xf32>
    %178 = arith.mulf %174, %173 : vector<8x128xf32>
    %179 = arith.addf %177, %178 : vector<8x128xf32>
    %180 = math.tanh %179 : vector<8x128xf32>
    %181 = arith.mulf %176, %180 : vector<8x128xf32>
    %182 = vector.broadcast %159 : i32 to vector<8x1xi32>
    %183 = arith.cmpi sgt, %21, %182 : vector<8x1xi32>
    %cst_59 = arith.constant 0.000000e+00 : f32
    %184 = vector.shape_cast %183 : vector<8x1xi1> to vector<8x1xi1>
    %185 = vector.broadcast %184 : vector<8x1xi1> to vector<8x128xi1>
    %186 = vector.broadcast %cst_59 : f32 to vector<8x128xf32>
    %187 = arith.select %185, %181, %186 : vector<8x128xi1>, vector<8x128xf32>
    %188 = arith.index_cast %158 : i32 to index
    %c0_60 = arith.constant 0 : index
    %c0_61 = arith.constant 0 : index
    %189 = vector.load %arg7[%188, %c0_60, %c0_61] : memref<4x8x128xf32, #tpu.memory_space<vmem>>, vector<1x8x128xf32>
    %190 = vector.shape_cast %189 : vector<1x8x128xf32> to vector<8x128xf32>
    %191 = vector.shape_cast %187 : vector<8x128xf32> to vector<1x8x128xf32>
    tpu.vector_store %arg7[%188, %c0_60, %c0_61], %191 {strides = array<i32>} : memref<4x8x128xf32, #tpu.memory_space<vmem>>, vector<1x8x128xf32>,
    %192 = vector.shape_cast %183 : vector<8x1xi1> to vector<8x1xi1>
    %193 = vector.broadcast %192 : vector<8x1xi1> to vector<8x128xi1>
    %194 = arith.select %193, %181, %151 : vector<8x128xi1>, vector<8x128xf32>
    %195 = vector.shape_cast %183 : vector<8x1xi1> to vector<8x1xi1>
    %196 = vector.broadcast %195 : vector<8x1xi1> to vector<8x128xi1>
    %197 = arith.select %196, %179, %154 : vector<8x128xi1>, vector<8x128xf32>
    %c4_i32_62 = arith.constant 4 : i32
    %c0_63 = arith.constant 0 : index
    %c0_64 = arith.constant 0 : index
    %c0_65 = arith.constant 0 : index
    %198 = vector.load %arg8[%c0_63, %c0_64, %c0_65] : memref<1x8x128xf32, #tpu.memory_space<vmem>>, vector<1x8x128xf32>
    %199 = vector.shape_cast %198 : vector<1x8x128xf32> to vector<8x128xf32>
    %200 = vector.shape_cast %194 : vector<8x128xf32> to vector<1x8x128xf32>
    tpu.vector_store %arg8[%c0_63, %c0_64, %c0_65], %200 {strides = array<i32>} : memref<1x8x128xf32, #tpu.memory_space<vmem>>, vector<1x8x128xf32>,
    %c0_66 = arith.constant 0 : index
    %c0_67 = arith.constant 0 : index
    %c0_68 = arith.constant 0 : index
    %201 = vector.load %arg9[%c0_66, %c0_67, %c0_68] : memref<1x8x128xf32, #tpu.memory_space<vmem>>, vector<1x8x128xf32>
    %202 = vector.shape_cast %201 : vector<1x8x128xf32> to vector<8x128xf32>
    %203 = vector.shape_cast %197 : vector<8x128xf32> to vector<1x8x128xf32>
    tpu.vector_store %arg9[%c0_66, %c0_67, %c0_68], %203 {strides = array<i32>} : memref<1x8x128xf32, #tpu.memory_space<vmem>>, vector<1x8x128xf32>,
    return
  }
  func.func @transform_0(%arg0: i32, %arg1: i32) -> (i32, i32, i32) {
    %c2_i32 = arith.constant 2 : i32
    %0 = arith.muli %c2_i32, %arg1 : i32
    %c2_i32_0 = arith.constant 2 : i32
    %1 = arith.subi %c2_i32_0, %0 : i32
    %2 = arith.muli %arg0, %1 : i32
    %3 = arith.addi %arg1, %2 : i32
    %c0_i32 = arith.constant 0 : i32
    %c0_i32_1 = arith.constant 0 : i32
    %c0_i32_2 = arith.constant 0 : i32
    return %3, %c0_i32, %c0_i32_1 : i32, i32, i32
  }
  func.func @transform_1(%arg0: i32, %arg1: i32) -> (i32, i32) {
    %c0_i32 = arith.constant 0 : i32
    %c0_i32_0 = arith.constant 0 : i32
    %c0_i32_1 = arith.constant 0 : i32
    return %c0_i32, %c0_i32_0 : i32, i32
  }
  func.func @transform_2(%arg0: i32, %arg1: i32) -> (i32, i32, i32) {
    %c0_i32 = arith.constant 0 : i32
    %c0_i32_0 = arith.constant 0 : i32
    %c0_i32_1 = arith.constant 0 : i32
    return %arg0, %c0_i32, %c0_i32_0 : i32, i32, i32
  }
  func.func @transform_3(%arg0: i32, %arg1: i32) -> (i32, i32, i32) {
    %c0_i32 = arith.constant 0 : i32
    %c0_i32_0 = arith.constant 0 : i32
    %c0_i32_1 = arith.constant 0 : i32
    return %arg0, %c0_i32, %c0_i32_0 : i32, i32, i32
  }
  func.func @transform_4(%arg0: i32, %arg1: i32) -> (i32, i32, i32) {
    %c0_i32 = arith.constant 0 : i32
    %c0_i32_0 = arith.constant 0 : i32
    %c0_i32_1 = arith.constant 0 : i32
    return %arg0, %c0_i32, %c0_i32_0 : i32, i32, i32
  }
  func.func @transform_5(%arg0: i32, %arg1: i32) -> (i32, i32, i32) {
    %c2_i32 = arith.constant 2 : i32
    %0 = arith.muli %c2_i32, %arg1 : i32
    %c2_i32_0 = arith.constant 2 : i32
    %1 = arith.subi %c2_i32_0, %0 : i32
    %2 = arith.muli %arg0, %1 : i32
    %3 = arith.addi %arg1, %2 : i32
    %c0_i32 = arith.constant 0 : i32
    %c0_i32_1 = arith.constant 0 : i32
    return %3, %c0_i32, %arg0 : i32, i32, i32
  }
  func.func @transform_6(%arg0: i32, %arg1: i32) -> (i32, i32, i32) {
    %c0_i32 = arith.constant 0 : i32
    %c0_i32_0 = arith.constant 0 : i32
    %c0_i32_1 = arith.constant 0 : i32
    return %arg0, %c0_i32, %c0_i32_0 : i32, i32, i32
  }
  func.func @transform_7(%arg0: i32, %arg1: i32) -> (i32, i32, i32) {
    %c0_i32 = arith.constant 0 : i32
    %c0_i32_0 = arith.constant 0 : i32
    %c0_i32_1 = arith.constant 0 : i32
    return %arg0, %c0_i32, %c0_i32_0 : i32, i32, i32
  }
}

</mosaic_0001>

<bundles_post_ra>
// kernel: tpu_custom_call.1
= control target key start
LH: loop header
LB: loop body
LE: loop exit
PB: predicated region body
PF: predicated region fallthrough
CT: control target
= control target key end

     0   :  { %s3373_s0 = inlined_call_operand.hbm [shape: bf16[12,8,64], index: 0, kind: input, shape index: {}]   ;;  %s3374_s1 = inlined_call_operand.vmem [shape: s32[8,1], index: 1, kind: input, shape index: {}]   ;;  %s3375_s2 = inlined_call_operand.hbm [shape: bf16[2,64,512], index: 2, kind: input, shape index: {}]   ;;  %s3376_s3 = inlined_call_operand.hbm [shape: bf16[2,128,512], index: 3, kind: input, shape index: {}]   ;;  %s3377_s4 = inlined_call_operand.vmem [shape: f32[2,1,512], index: 4, kind: input, shape index: {}]   ;;  %s3378_s5 = inlined_call_operand.hbm [shape: f32[12,8,256], index: 5, kind: output, shape index: {0}]   ;;  %s3379_s6 = inlined_call_operand.hbm [shape: f32[2,8,128], index: 6, kind: output, shape index: {1}]   ;;  %s3380_s7 = inlined_call_operand.hbm [shape: f32[2,8,128], index: 7, kind: output, shape index: {2}]  }
   0x1   :  { %3414 = sst [smem:[#allocation30_spill]] %s3373_s0 }
   0x2   :  { %3415 = sst [smem:[#allocation31_spill]] %s3374_s1 }
   0x3   :  { %3416 = sst [smem:[#allocation32_spill]] %s3375_s2 }
   0x4   :  { %3417 = sst [smem:[#allocation33_spill]] %s3376_s3 }
   0x5   :  { %3418 = sst [smem:[#allocation34_spill]] %s3377_s4 }
   0x6   :  { %3419 = sst [smem:[#allocation35_spill]] %s3378_s5 }
   0x7   :  { %3420 = sst [smem:[#allocation36_spill]] %s3379_s6 }
   0x8   :  { %3421 = sst [smem:[#allocation37_spill]] %s3380_s7 }
   0x9   :  { %13 = vsyncpa [#allocation4], 0 }
   0xa   :  { %15 = vsyncpa [#allocation4 + $0x1], 0 }
   0xb   :  { %16 = vsyncpa [#allocation7], 0 }
   0xc   :  { %18 = vsyncpa [#allocation7 + $0x1], 0 }
   0xd   :  { %19 = vsyncpa [#allocation5], 0 }
   0xe   :  { %21 = vsyncpa [#allocation5 + $0x1], 0 }
   0xf   :  { %22 = vsyncpa [#allocation11], 0 }
  0x10   :  { %24 = vsyncpa [#allocation11 + $0x1], 0  ;;  %s2522_s24 = smov 0   ;;  %s2524_s25 = smov 0  }
  0x11   :  { %s2526_s26 = smov 0   ;;  %s2528_s27 = smov 0  }
  0x12   :  { %s2530_s28 = smov 0   ;;  %s2532_s29 = smov 0  }
  0x13   :  { %s2534_s30 = smov 0   ;;  %s2536_s8 = smov 0  }
  0x14   :  { %s2538_s9 = smov 0   ;;  %s2540_s10 = smov 0  }
  0x15   :  { %s2542_s11 = smov 0   ;;  %s2544_s12 = smov 0  }
  0x16   :  { %s2546_s13 = smov 0   ;;  %s2548_s14 = smov 0  }
  0x17 LB: > { %3422 = sst [smem:[#allocation17_spill]] %s2429_s28  ;;  %s2591_s15 = sadd.s32 4294967295, %s2465_s14   ;;  %s2465_s14 = sphi %s2548_s14, %s30_s14   ;;  %s2461_s13 = sphi %s2546_s13, %s3501_s13   ;;  %s2457_s12 = sphi %s2544_s12, %s3500_s12   ;;  %s2453_s11 = sphi %s2542_s11, %s3492_s11   ;;  %s2449_s10 = sphi %s2540_s10, %s3491_s10   ;;  %s2445_s9 = sphi %s2538_s9, %s3490_s9   ;;  %s2441_s8 = sphi %s2536_s8, %s3489_s8   ;;  %s2437_s30 = sphi %s2534_s30, %s3488_s30   ;;  %s2433_s29 = sphi %s2532_s29, %s3499_s29   ;;  %s2429_s28 = sphi %s2530_s28, %s3498_s28   ;;  %s2425_s27 = sphi %s2528_s27, %s3486_s27   ;;  %s2421_s26 = sphi %s2526_s26, %s3497_s26   ;;  %s2417_s25 = sphi %s2524_s25, %s3496_s25   ;;  %s2413_s24 = sphi %s2522_s24, %s3495_s24  }
  0x18   : > { %3423 = sst [smem:[#allocation18_spill]] %s2441_s8  ;;  %s3381_s16 = sadd.s32 4294967294, %s2465_s14  }
  0x19   : > { %3424 = sst [smem:[#allocation19_spill]] %s2445_s9  ;;  %p3392_p0 = scmp.eq.s32.totalorder %s2465_s14, 0 }
  0x1a   : > { %3425 = sst [smem:[#allocation20_spill]] %s2449_s10  ;;  %p3391_p1 = scmp.eq.s32.totalorder %s2591_s15, 0 }
  0x1b   : > { %3426 = sst [smem:[#allocation21_spill]] %s2453_s11  ;;  %p111_p2 = scmp.ne.s32.totalorder %s2433_s29, %s2429_s28 }
  0x1c   : > { %3427 = sst [smem:[#allocation22_spill]] %s2457_s12  ;;  %p117_p3 = scmp.ne.s32.totalorder %s2429_s28, %s2425_s27 }
  0x1d   : > { %3428 = sst [smem:[#allocation23_spill]] %s2461_s13  ;;  %p3390_p4 = scmp.eq.s32.totalorder %s2591_s15, 5 }
  0x1e   : > { %p2603_p5 = por %p111_p2, %p3392_p0  ;;  %p2609_p6 = scmp.eq.s32.totalorder %s3381_s16, 5 }
  0x1f   : > { %p2615_p7 = por %p117_p3, %p3391_p1  ;;  %p2621_p8 = por %p3390_p4, %p111_p2 }
  0x20   : > { %p2627_p9 = por %p2609_p6, %p117_p3  ;;  %p3389_p10 = scmp.lt.s32.totalorder %s2465_s14, 6 }
  0x21   : > { %s3431_s20 = scalar_select %p2615_p7, 1, 0 }
  0x22   : > { %s3433_s21 = scalar_select %p2621_p8, 1, 0 }
  0x23   : > { %3432 = sst [smem:[#allocation24_spill]] %s3431_s20  ;;  %s309_s23 = sand.u32 1, %s2465_s14  }
  0x24   : > { %3434 = sst [smem:[#allocation25_spill]] %s3433_s21  ;;  %s3388_s27 = sand.u32 1, %s2433_s29  }
  0x25   : > { %s3435_s22 = scalar_select %p2627_p9, 1, 0 }
  0x26   : > { %s1750_s16 = sshll.u32 %s3388_s27, 7  ;;  %s1865_s17 = sshll.u32 %s2461_s13, 11 }
  0x27   : > { %3436 = sst [smem:[#allocation26_spill]] %s3435_s22  ;;  %s3437_s2 = sld [smem:[#allocation32_spill]] }
  0x28   : > { %s313_s21 = scalar_lea.vmem [#allocation6], %s1750_s16  ;;  %p2646_p11 = pnand %p3389_p10, %p2603_p5 }
  0x29   : > { %s320_s1 = sshll.u32 %s313_s21, 4  ;;  %s2652_s27 = scalar_lea.sflag [#allocation7], %s309_s23  ;;  %s2650_s1 = int_to_ptr.vmem [resolvable:$true] %s320_s1 }
  0x2a   : > { %p3407_p13 = pneg %p2646_p11 }
  0x2d   : > { %s2640_s6 = scalar_lea.hbm %s3437_s2, %s1865_s17  ;;  %s2170_s17 = scalar_lea.hbm %s3437_s2, 4096 }
  0x2e   : > { %s2165_s5 = scalar_lea.hbm %s2640_s6, 2048  ;;  %p2171_p5 = scmp.lt.u32.totalorder %s2640_s6, %s3437_s2 }
  0x2f   : > { %p2166_p12 = scmp.ne.s32.totalorder %s2640_s6, %s2165_s5  ;;  %p2172_p10 = scmp.lt.u32.totalorder %s2170_s17, %s2165_s5 }
  0x30   : > { %p2174_p1 = scmp.lt.u32.totalorder %s2165_s5, %s2640_s6 }
  0x31   : > { %p2168_p2 = pnand %p3407_p13, %p2166_p12  ;;  %p2173_p4 = por %p2172_p10, %p2171_p5 }
  0x33   : > { %p2169_p3 = pneg %p2168_p2  ;;  %p2175_p0 = por %p2174_p1, %p2173_p4 }
  0x35   : > { %p2176_p9 = pnand %p2175_p0, %p2169_p3 }
  0x37   : > { %2179 = shalt.err (!%p2176_p9)
}
  0x38   : > { %s2180_s23 = scalar_lea.vmem %s2650_s1, 2048  ;;  %s2467_s7 = smov [#allocation6]  }
  0x39   : > { %p2181_p12 = scmp.ne.s32.totalorder %s2650_s1, %s2180_s23  ;;  %s2185_s16 = sshll.u32 %s2467_s7, 4  ;;  %s2186_s16 = int_to_ptr.vmem [resolvable:$false] %s2185_s16 }
  0x3a   : > { %s2187_s18 = scalar_lea.vmem %s2186_s16, 4096  ;;  %p2188_p7 = scmp.lt.s32.totalorder %s2650_s1, %s2186_s16 }
  0x3b   : > { %p2183_p2 = pnand %p2181_p12, %p3407_p13  ;;  %p2189_p10 = scmp.lt.s32.totalorder %s2187_s18, %s2180_s23 }
  0x3d   : > { %p2184_p8 = pneg %p2183_p2  ;;  %p2190_p5 = por %p2189_p10, %p2188_p7 }
  0x3f   : > { %p2191_p1 = pnand %p2190_p5, %p2184_p8 }
  0x41   : > { %2194 = shalt.err (!%p2191_p1)
}
  0x42   : > { %s3395_s5 = smov 256   ;;  %s3396_s17 = smov 16  }
  0x43   : > { %1888 = dma.hbm_to_vmem [thread:$0]  (!%p2646_p11), %s2640_s6, 2048, %s2650_s1, %s2652_s27, %s3395_s5, %s3395_s5, %s3396_s17  }
  0x44   : > { %s3439_s21 = sand.u32 1, %s2433_s29   ;;  %p1756_p0 = scmp.ge.s32.totalorder %s2465_s14, 1 }
  0x45   : > { %s1753_s23 = sshll.u32 %s3439_s21, 8  ;;  %p356_p4 = scmp.lt.s32.totalorder %s2465_s14, 7 }
  0x46   : > { %s334_s7 = scalar_lea.vmem [#allocation8], %s1753_s23  ;;  %s39_s2 = sadd.s32 1, %s2457_s12 }
  0x47   : > { %s2687_s16 = sshll.u32 %s334_s7, 4  ;;  %p2689_p7 = pnand %p1756_p0, %p356_p4  ;;  %s2799_s16 = int_to_ptr.vmem [resolvable:$true] %s2687_s16 }
  0x48   : > { %s42_s4 = sadd.s32 1, %s2461_s13  ;;  %p40_p8 = scmp.ge.s32.totalorder %s39_s2, 3 }
  0x49   : > { %s3440_s18 = scalar_select %p2689_p7, 1, 0 }
  0x4a   : > { %s1740_s1 = sshll.u32 %s2457_s12, 1  ;;  %s57_s21 = sadd.s32 1, %s2445_s9 }
  0x4b   : > { %s47_s6 = ssub.s32 2, %s1740_s1  ;;  %s3503_s2 = smov (%p40_p8, %s39_s2), 0 }
  0x4c   : > { %3441 = sst [smem:[#allocation27_spill]] %s3503_s2  ;;  %s3505_s4 = smov (!%p40_p8, %s42_s4), %s2461_s13 }
  0x4d   : > { %s48_s23 = smul.u32 %s2461_s13, %s47_s6  ;;  %s1741_s7 = sshll.u32 %s3503_s2, 1 }
  0x4e   : > { %p44_p9 = scmp.ge.s32.totalorder %s3505_s4, 2  ;;  %s51_s5 = ssub.s32 2, %s1741_s7 }
  0x4f   : > { %s49_s17 = sadd.s32 %s2457_s12, %s48_s23  ;;  %p64_p3 = scmp.ne.s32.totalorder %s2445_s9, %s2441_s8 }
  0x50   : > { %s3507_s4 = smov (%p44_p9, %s3505_s4), 0  ;;  %p3443_p12 = scmp.eq.s32.totalorder %s2465_s14, 0 }
  0x51   : > { %3442 = sst [smem:[#allocation28_spill]] %s3507_s4  ;;  %p70_p10 = scmp.ne.s32.totalorder %s2441_s8, %s2437_s30 }
  0x52   : > { %p2709_p2 = por %p3443_p12, %p64_p3  ;;  %s52_s6 = smul.u32 %s51_s5, %s3507_s4 }
  0x53   : > { %s101_s7 = ssub.s32 %s2461_s13, %s3507_s4  ;;  %p3445_p5 = scmp.eq.s32.totalorder %s2591_s15, 0 }
  0x54   : > { %p102_p0 = scmp.eq.s32.totalorder %s101_s7, 0  ;;  %s53_s12 = sadd.s32 %s52_s6, %s3503_s2 }
  0x55   : > { %p2720_p1 = por %p3445_p5, %p70_p10  ;;  %s192_s10 = sadd.s32 1, %s2421_s26 }
  0x56   : > { %s54_s11 = ssub.s32 %s49_s17, %s53_s12  ;;  %p202_p4 = scmp.ne.s32.totalorder %s2421_s26, %s2417_s25 }
  0x57   : > { %s3446_s23 = scalar_select %p2720_p1, 1, 0 }
  0x58   : > { %p55_p8 = scmp.eq.s32.totalorder %s54_s11, 0  ;;  %s189_s20 = sor.u32 %s101_s7, %s54_s11 }
  0x59   : > { %s3447_s30 = sadd.s32 1, %s2433_s29  ;;  %p190_p9 = scmp.eq.s32.totalorder %s189_s20, 0 }
  0x5a   : > { %s2731_s28 = scalar_select %p102_p0, %s2433_s29, %s3447_s30  }
  0x5b   : > { %s2734_s5 = scalar_select %p55_p8, %s2445_s9, %s57_s21  }
  0x5c   : > { %p3449_p3 = scmp.eq.s32.totalorder %s2591_s15, 5  ;;  %p208_p10 = scmp.ne.s32.totalorder %s2417_s25, %s2413_s24 }
  0x5d   : > { %3448 = sst [smem:[#allocation29_spill]] %s2734_s5  ;;  %s284_s6 = sand.u32 1, %s2445_s9  }
  0x5e   : > { %p2738_p12 = por %p3449_p3, %p202_p4  ;;  %p2750_p5 = por %p2609_p6, %p208_p10 }
  0x5f   : > { %s2746_s2 = scalar_select %p190_p9, %s2421_s26, %s192_s10  }
  0x60   : > { %s3450_s4 = scalar_select %p2738_p12, 1, 0 }
  0x61   : > { %s3451_s12 = scalar_select %p2750_p5, 1, 0 }
  0x62   : > { %s1746_s11 = sshll.u32 %s284_s6, 4  ;;  %s1864_s7 = sshll.u32 %s49_s17, 8 }
  0x63   : > { %s3452_s0 = sld [smem:[#allocation30_spill]]  ;;  %s288_s5 = scalar_lea.vmem [#allocation3], %s1746_s11 }
  0x64   : > { %s299_s9 = sshll.u32 %s288_s5, 4  ;;  %p3453_p0 = scmp.lt.s32.totalorder %s2465_s14, 6  ;;  %s2767_s9 = int_to_ptr.vmem [resolvable:$true] %s299_s9 }
  0x65   : > { %s2769_s19 = scalar_lea.sflag [#allocation4], %s284_s6 }
  0x66   : > { %p2763_p4 = pnand %p3453_p0, %p2709_p2 }
  0x68   : > { %p2197_p8 = pneg %p2763_p4 }
  0x69   : > { %s2757_s20 = scalar_lea.hbm %s3452_s0, %s1864_s7  ;;  %s2200_s11 = scalar_lea.hbm %s3452_s0, 768 }
  0x6a   : > { %s2195_s17 = scalar_lea.hbm %s2757_s20, 256  ;;  %p2201_p2 = scmp.lt.u32.totalorder %s2757_s20, %s3452_s0 }
  0x6b   : > { %p2196_p6 = scmp.ne.s32.totalorder %s2757_s20, %s2195_s17  ;;  %p2202_p10 = scmp.lt.u32.totalorder %s2200_s11, %s2195_s17 }
  0x6c   : > { %p2204_p13 = scmp.lt.u32.totalorder %s2195_s17, %s2757_s20 }
  0x6d   : > { %p2198_p9 = pnand %p2197_p8, %p2196_p6  ;;  %p2203_p0 = por %p2202_p10, %p2201_p2 }
  0x6f   : > { %p2199_p3 = pneg %p2198_p9  ;;  %p2205_p5 = por %p2204_p13, %p2203_p0 }
  0x71   : > { %p2206_p12 = pnand %p2205_p5, %p2199_p3 }
  0x73   : > { %2209 = shalt.err (!%p2206_p12)
}
  0x74   : > { %s2210_s6 = scalar_lea.vmem %s2767_s9, 256  ;;  %s2470_s21 = smov [#allocation3]  }
  0x75   : > { %p2211_p6 = scmp.ne.s32.totalorder %s2767_s9, %s2210_s6  ;;  %s2215_s1 = sshll.u32 %s2470_s21, 4  ;;  %s2216_s1 = int_to_ptr.vmem [resolvable:$false] %s2215_s1 }
  0x76   : > { %s2217_s5 = scalar_lea.vmem %s2216_s1, 512  ;;  %p2218_p7 = scmp.lt.s32.totalorder %s2767_s9, %s2216_s1 }
  0x77   : > { %p2213_p9 = pnand %p2211_p6, %p2197_p8  ;;  %p2219_p2 = scmp.lt.s32.totalorder %s2217_s5, %s2210_s6 }
  0x79   : > { %p2214_p1 = pneg %p2213_p9  ;;  %p2220_p10 = por %p2219_p2, %p2218_p7 }
  0x7b   : > { %p2221_p13 = pnand %p2220_p10, %p2214_p1 }
  0x7d   : > { %2224 = shalt.err (!%p2221_p13)
}
  0x7e   : > { %s2471_s17 = smov 64   ;;  %s2472_s11 = smov 4  }
  0x7f   : > { %1885 = dma.hbm_to_vmem [thread:$0]  (!%p2763_p4), %s2757_s20, 256, %s2767_s9, %s2769_s19, %s2471_s17, %s2471_s17, %s2472_s11  }
  0x80   : > { %s1866_s7 = sshll.u32 %s2461_s13, 12  ;;  %s3455_s3 = sld [smem:[#allocation33_spill]] }
  0x81   : > { %p3456_p1 = pneg %p2646_p11 }
  0x86   : > { %s2804_s6 = scalar_lea.hbm %s3455_s3, %s1866_s7  ;;  %s2230_s20 = scalar_lea.hbm %s3455_s3, 8192 }
  0x87   : > { %s2225_s1 = scalar_lea.hbm %s2804_s6, 4096  ;;  %p2231_p4 = scmp.lt.u32.totalorder %s2804_s6, %s3455_s3 }
  0x88   : > { %p2226_p7 = scmp.ne.s32.totalorder %s2804_s6, %s2225_s1  ;;  %p2232_p8 = scmp.lt.u32.totalorder %s2230_s20, %s2225_s1 }
  0x89   : > { %p2234_p0 = scmp.lt.u32.totalorder %s2225_s1, %s2804_s6 }
  0x8a   : > { %p2228_p12 = pnand %p2226_p7, %p3456_p1  ;;  %p2233_p3 = por %p2232_p8, %p2231_p4 }
  0x8c   : > { %p2229_p5 = pneg %p2228_p12  ;;  %p2235_p6 = por %p2234_p0, %p2233_p3 }
  0x8e   : > { %p2236_p9 = pnand %p2235_p6, %p2229_p5 }
  0x90   : > { %2239 = shalt.err (!%p2236_p9)
}
  0x91   : > { %s2240_s17 = scalar_lea.vmem %s2799_s16, 4096  ;;  %p3457_p10 = pmov %p3456_p1 }
  0x92   : > { %p2241_p2 = scmp.ne.s32.totalorder %s2799_s16, %s2240_s17  ;;  %s2473_s11 = smov [#allocation8]  }
  0x93   : > { %s2245_s7 = sshll.u32 %s2473_s11, 4  ;;  %s2246_s7 = int_to_ptr.vmem [resolvable:$false] %s2245_s7 }
  0x94   : > { %p2243_p13 = pnand %p2241_p2, %p3457_p10  ;;  %s2247_s30 = scalar_lea.vmem %s2246_s7, 8192 }
  0x95   : > { %p2248_p1 = scmp.lt.s32.totalorder %s2799_s16, %s2246_s7  ;;  %p2249_p12 = scmp.lt.s32.totalorder %s2247_s30, %s2240_s17 }
  0x96   : > { %p2244_p7 = pneg %p2243_p13 }
  0x97   : > { %p2250_p4 = por %p2249_p12, %p2248_p1 }
  0x99   : > { %p2251_p8 = pnand %p2250_p4, %p2244_p7 }
  0x9b   : > { %2254 = shalt.err (!%p2251_p8)
}
  0x9c   : > { %s3458_s21 = smov 16   ;;  %s3459_s1 = smov 256  }
  0x9d   : > { %1891 = dma.hbm_to_vmem [thread:$0]  (!%p2646_p11), %s2804_s6, 4096, %s2799_s16, %s2652_s27, %s3459_s1, %s3459_s1, %s3458_s21  }
  0x9e   : > { %p3460_p5 = scmp.ne.s32.totalorder %s3440_s18, 0 }
  0x9f   : > { %s362_s10 = sand.u32 (!%p3460_p5), 1, %s2441_s8   ;;  %p3461_p3 = scmp.ne.s32.totalorder (!%p3460_p5), %s3446_s23, 0 }
  0xa0   : > { %360 = sbr.rel (%p3460_p5) target bundleno = 1358 (0x54e), region = 40  ;;  %s2836_s9 = sshll.u32 (!%p3460_p5), %s362_s10, 4 }
  0xa1   : > { %s363_s20 = scalar_lea.sflag (!%p3460_p5), [#allocation4], %s362_s10 }
  0xa7   : > { %2396 = dma.done.wait (%p3461_p3), %s363_s20, 256  }
  0xa8   : > { %2398 = vsyncadd (%p3461_p3), %s363_s20, 4294967040  ;;  %s3462_s22 = sld [smem:[#allocation17_spill]]  ;;  %s3463_s27 = sld [smem:[#allocation24_spill]] }
  0xa9   : > { %s3410_s16 = sand.u32 1, %s2591_s15  }
  0xaa   : > { %s372_s5 = scalar_lea.sflag [#allocation7], %s3410_s16 }
  0xae   : > { %s373_s18 = sand.u32 1, %s3462_s22   ;;  %p3464_p11 = scmp.ne.s32.totalorder %s3463_s27, 0 }
  0xaf   : > { %s1758_s6 = sshll.u32 %s373_s18, 7 }
  0xb0   : > { %s2847_s17 = scalar_lea.vmem [#allocation6], %s1758_s6 }
  0xb1   : > { %2400 = dma.done.wait (%p3464_p11), %s372_s5, 6144  }
  0xb2   : > { %2402 = vsyncadd (%p3464_p11), %s372_s5, 4294961152  ;;  %s3465_s23 = sld [smem:[#allocation21_spill]]  ;;  %s3466_s11 = sld [smem:[#allocation20_spill]] }
  0xb3   : > { %s1759_s7 = sshll.u32 %s373_s18, 8  ;;  %s3413_s30 = sand.u32 1, %s2417_s25  }
  0xb4   : > { %s1760_s21 = sshll.u32 %s3413_s30, 5  ;;  %s1761_s1 = sshll.u32 %s373_s18, 3 }
  0xb5   : > { %s3467_s19 = sld [smem:[#allocation34_spill]]  ;;  %s2871_s8 = scalar_lea.vmem [#allocation8], %s1759_s7 }
  0xb6   : > { %s2873_s30 = scalar_lea.vmem [#allocation9], %s1760_s21  ;;  %s2875_s18 = scalar_lea.vmem [#allocation10], %s1761_s1 }
  0xb8   : > { %p444_p0 = scmp.lt.s32.totalorder %s3465_s23, 1  ;;  %s1764_s10 = sshll.u32 %s3466_s11, 1 }
  0xb9   : > { %s455_s20 = ssub.s32 2, %s1764_s10  ;;  %s2877_s10 = scalar_lea.vmem [#allocation12], %s1761_s1 }
  0xba   : > { %s445_s22 = scalar_select %p444_p0, %s3465_s23, 1 }
  0xbb   : > { %s456_s6 = smul.u32 %s3465_s23, %s455_s20  ;;  %p1766_p6 = scmp.ne.s32.totalorder %s3466_s11, 0 }
  0xbc   : > { %s1763_s16 = sshll.u32 %s445_s22, 2  ;;  %v2474_v0 = vmov (!%p1766_p6), 0.0  }
  0xbd   : > { %s2863_s0 = scalar_lea.vmem %s3467_s19, %s1763_s16  ;;  %s2866_s3 = sadd.s32 %s3466_s11, %s456_s6  ;;  %463 = vst [vmem:[%s2875_s18] sm:$0xff] (!%p1766_p6), %v2474_v0  ;;  %464 = vst [vmem:[%s2877_s10] sm:$0xff] (!%p1766_p6), %v2474_v0 }
  0xbe   : > { %s2869_s13 = sshll.u32 %s2866_s3, 2  ;;  %462 = sbr.rel (%p1766_p6) target bundleno = 197 (0xc5), region = 56 }
  0xc5 PF: > { %v2027_v1 = vld [vmem:[%s2847_s17 + $0x4] ss:$16 sps:$4 sm:$0xff]   ;;  %v2029_v2 = vld [vmem:[%s2847_s17 + $0xc] ss:$16 sps:$4 sm:$0xff]   ;;  %v2475_v3 = vmov 0   ;;  %s3468_s19 = scalar_lea.vmem [#allocation3], %s2836_s9  ;;  %v487_v59 = vlaneseq }
  0xc6   : > { %636 = vmatprep.mubr.bf16.mxu0 %v2475_v3  ;;  %689 = vmatprep.mubr.bf16.mxu1 %v2475_v3  ;;  %v2031_v4 = vld [vmem:[%s2847_s17] ss:$16 sps:$4 sm:$0xff]   ;;  %v2032_v5 = vld [vmem:[%s2847_s17 + $0x8] ss:$16 sps:$4 sm:$0xff]   ;;  %v2033_v6 = vld [vmem:[%s2847_s17 + $0x24] ss:$16 sps:$4 sm:$0xff]  }
  0xc7   : > { %604 = vmatprep.subr.bf16.mxu0 %v2027_v1  ;;  %2025 = vset.pattern.permute.xlu0 %v2475_v3  ;;  %v2035_v7 = vld [vmem:[%s2847_s17 + $0x2c] ss:$16 sps:$4 sm:$0xff]   ;;  %v2037_v8 = vld [vmem:[%s2847_s17 + $0x20] ss:$16 sps:$4 sm:$0xff]   ;;  %v2038_v9 = vld [vmem:[%s2847_s17 + $0x28] ss:$16 sps:$4 sm:$0xff]  }
  0xc8   : > { %657 = vmatprep.subr.bf16.mxu1 %v2029_v2  ;;  %2026 = vset.pattern.permute.xlu1 %v2475_v3  ;;  %v2039_v10 = vld [vmem:[%s2847_s17 + $0x44] ss:$16 sps:$4 sm:$0xff]   ;;  %v2041_v11 = vld [vmem:[%s2847_s17 + $0x4c] ss:$16 sps:$4 sm:$0xff]   ;;  %v2043_v12 = vld [vmem:[%s2847_s17 + $0x40] ss:$16 sps:$4 sm:$0xff]  }
  0xc9   : > { %605 = vmatpush1.bf16.msra.mxu0 %v2031_v4  ;;  %658 = vmatpush1.bf16.msra.mxu1 %v2032_v5  ;;  %v2044_v13 = vld [vmem:[%s2847_s17 + $0x48] ss:$16 sps:$4 sm:$0xff]   ;;  %v2045_v14 = vld [vmem:[%s2847_s17 + $0x64] ss:$16 sps:$4 sm:$0xff]   ;;  %v2047_v15 = vld [vmem:[%s2847_s17 + $0x6c] ss:$16 sps:$4 sm:$0xff]  }
  0xca   : > { %606 = vmatprep.subr.bf16.mxu0 %v2033_v6  ;;  %659 = vmatprep.subr.bf16.mxu1 %v2035_v7  ;;  %v2049_v16 = vld [vmem:[%s2847_s17 + $0x60] ss:$16 sps:$4 sm:$0xff]   ;;  %v2050_v17 = vld [vmem:[%s2847_s17 + $0x68] ss:$16 sps:$4 sm:$0xff]   ;;  %v2903_v18 = vld [vmem:[%s2871_s8 + $0x4] ss:$16 sps:$4 sm:$0xff]   ;;  %s3470_s17 = smov %s3468_s19 }
  0xcb   : > { %v2906_v19 = vld [vmem:[%s2871_s8 + $0xc] ss:$16 sps:$4 sm:$0xff]   ;;  %v2051_v20 = vld [vmem:[%s3468_s19] sm:$0xff]   ;;  %vm597_vm0 = vcmask 523264   ;;  %v2914_v22 = vld [vmem:[%s2871_s8 + $0x8] ss:$16 sps:$4 sm:$0xff]  }
  0xcc   : > { %v2911_v21 = vld [vmem:[%s2871_s8] ss:$16 sps:$4 sm:$0xff]   ;;  %v2917_v23 = vld [vmem:[%s2871_s8 + $0x24] ss:$16 sps:$4 sm:$0xff]   ;;  %v2922_v24 = vld [vmem:[%s2871_s8 + $0x2c] ss:$16 sps:$4 sm:$0xff]  }
  0xcd   : > { %607 = vmatpush1.bf16.msra.mxu0 %v2037_v8  ;;  %660 = vmatpush1.bf16.msra.mxu1 %v2038_v9  ;;  %v2927_v25 = vld [vmem:[%s2871_s8 + $0x20] ss:$16 sps:$4 sm:$0xff]   ;;  %v2932_v26 = vld [vmem:[%s2871_s8 + $0x28] ss:$16 sps:$4 sm:$0xff]   ;;  %s3469_s16 = sld [smem:[#allocation21_spill]]  ;;  %v488_v60 = vshrl.u32 %v487_v59, 7 }
  0xce   : > { %608 = vmatprep.subr.bf16.mxu0 %v2039_v10  ;;  %661 = vmatprep.subr.bf16.mxu1 %v2041_v11  ;;  %v2935_v27 = vld [vmem:[%s2871_s8 + $0x44] ss:$16 sps:$4 sm:$0xff]   ;;  %v2940_v28 = vld [vmem:[%s2871_s8 + $0x4c] ss:$16 sps:$4 sm:$0xff]   ;;  %v2947_v30 = vld [vmem:[%s2871_s8 + $0x40] ss:$16 sps:$4 sm:$0xff]  }
  0xcf   : > { %v2064_v29 = vld [vmem:[%s3470_s17 + $0x8] sm:$0xff]   ;;  %v2957_v32 = vld [vmem:[%s2871_s8 + $0x64] ss:$16 sps:$4 sm:$0xff]   ;;  %v2966_v34 = vld [vmem:[%s2871_s8 + $0x60] ss:$16 sps:$4 sm:$0xff]   ;;  %s3471_s20 = sld [smem:[#allocation31_spill]] }
  0xd0   : > { %v2952_v31 = vld [vmem:[%s2871_s8 + $0x48] ss:$16 sps:$4 sm:$0xff]   ;;  %v2960_v33 = vld [vmem:[%s2871_s8 + $0x6c] ss:$16 sps:$4 sm:$0xff]   ;;  %v2975_v36 = vld [vmem:[%s2871_s8 + $0x84] ss:$16 sps:$4 sm:$0xff]  }
  0xd1   : > { %609 = vmatpush1.bf16.msra.mxu0 %v2043_v12  ;;  %662 = vmatpush1.bf16.msra.mxu1 %v2044_v13  ;;  %v2972_v35 = vld [vmem:[%s2871_s8 + $0x68] ss:$16 sps:$4 sm:$0xff]   ;;  %v2980_v37 = vld [vmem:[%s2871_s8 + $0x8c] ss:$16 sps:$4 sm:$0xff]   ;;  %v2987_v38 = vld [vmem:[%s2871_s8 + $0x80] ss:$16 sps:$4 sm:$0xff]  }
  0xd2   : > { %610 = vmatprep.subr.bf16.mxu0 %v2045_v14  ;;  %663 = vmatprep.subr.bf16.mxu1 %v2047_v15  ;;  %v2992_v39 = vld [vmem:[%s2871_s8 + $0x88] ss:$16 sps:$4 sm:$0xff]   ;;  %v2997_v41 = vld [vmem:[%s2871_s8 + $0xa4] ss:$16 sps:$4 sm:$0xff]   ;;  %v3000_v42 = vld [vmem:[%s2871_s8 + $0xac] ss:$16 sps:$4 sm:$0xff]  }
  0xd3   : > { %s761_s9 = smul.u32 3, %s3469_s16  ;;  %s1054_s23 = sadd.s32 1, %s3469_s16  ;;  %v3011_v45 = vld [vmem:[%s2871_s8 + $0xa0] ss:$16 sps:$4 sm:$0xff]   ;;  %v3014_v46 = vld [vmem:[%s2871_s8 + $0xa8] ss:$16 sps:$4 sm:$0xff]  }
  0xd4   : > { %s1055_s7 = sadd.s32 %s2869_s13, %s1054_s23  ;;  %v3021_v48 = vld [vmem:[%s2871_s8 + $0xc4] ss:$16 sps:$4 sm:$0xff]   ;;  %v3024_v49 = vld [vmem:[%s2871_s8 + $0xcc] ss:$16 sps:$4 sm:$0xff]   ;;  %v3030_v51 = vld [vmem:[%s2871_s8 + $0xc0] ss:$16 sps:$4 sm:$0xff]  }
  0xd5   : > { %611 = vmatpush1.bf16.msra.mxu0 %v2049_v16  ;;  %664 = vmatpush1.bf16.msra.mxu1 %v2050_v17  ;;  %s762_s11 = sadd.s32 %s2869_s13, %s761_s9  ;;  %v1174_v43 = vstv %s1055_s7  ;;  %v3005_v44 = vld [vmem:[%s3471_s20] sm:$0xff]  ;;  %v3033_v52 = vld [vmem:[%s2871_s8 + $0xc8] ss:$16 sps:$4 sm:$0xff]   ;;  %v3041_v54 = vld [vmem:[%s2871_s8 + $0xec] ss:$16 sps:$4 sm:$0xff]   ;;  %v489_v61 = vsub.s32 0, %v488_v60 }
  0xd6   : > { %931 = vmatprep.subr.bf16.mxu0 %v2903_v18  ;;  %972 = vmatprep.subr.bf16.mxu1 %v2906_v19  ;;  %v1041_v40 = vstv %s762_s11  ;;  %vm1175_vm2 = vcmp.gt.s32.totalorder %v3005_v44, %v1174_v43  ;;  %v3038_v53 = vld [vmem:[%s2871_s8 + $0xe4] ss:$16 sps:$4 sm:$0xff]   ;;  %v3046_v55 = vld [vmem:[%s2871_s8 + $0xe0] ss:$16 sps:$4 sm:$0xff]   ;;  %v3049_v56 = vld [vmem:[%s2871_s8 + $0xe8] ss:$16 sps:$4 sm:$0xff]  }
  0xd7   : > { %vm1042_vm1 = vcmp.gt.s32.totalorder %v3005_v44, %v1041_v40  ;;  %v1176_v50 = vsel %vm1175_vm2, 1, %v2475_v3  ;;  %v3052_v57 = vld [vmem:[%s2875_s18] sm:$0xff]  ;;  %v497_v62 = vsub.s32 2, %v488_v60  ;;  %v493_v0 = vsub.s32 1, %v488_v60  ;;  %s1826_s22 = smul.u32 24, %s3469_s16  ;;  %s3143_s27 = ssub.s32 2, %s3469_s16 }
  0xd8   : > { %1785 = vmatmul.mubr.msk.bf16.vlgmr.msra.gmra.mrb[0].mxu0 %vm597_vm0, %v2051_v20  ;;  %1787 = vmatmul.mubr.msk.bf16.vlgmr.msra.gmra.mrb[0].mxu1 %vm597_vm0, %v2051_v20  ;;  %v1043_v47 = vsel %vm1042_vm1, 1, %v2475_v3  ;;  %v770_v58 = vpack.c.bf16 %v3052_v57, %v3052_v57  ;;  %v485_v63 = vld [vmem:[%s2863_s0] sm:$0xf]  ;;  %v501_v1 = vsub.s32 3, %v488_v60  ;;  %s1867_s0 = smul.u32 96, %s3469_s16  ;;  %s1188_s5 = sadd.s32 %s2869_s13, %s3143_s27 }
  0xd9   : > { %932 = vmatpush1.bf16.msra.mxu0 %v2911_v21  ;;  %973 = vmatpush1.bf16.msra.mxu1 %v2914_v22  ;;  %v490_v2 = vrot.slane %v485_v63, %v489_v61  ;;  %v498_v4 = vrot.slane %v485_v63, %v497_v62  ;;  %v494_v5 = vrot.slane %v485_v63, %v493_v0  ;;  %s1050_s6 = scalar_lea.vmem %s2873_s30, %s1826_s22 [#allocation9]  ;;  %s1320_s19 = smul.u32 4294967293, %s3469_s16 }
  0xda   : > { %933 = vmatprep.subr.bf16.mxu0 %v2917_v23  ;;  %974 = vmatprep.subr.bf16.mxu1 %v2922_v24  ;;  %v502_v6 = vrot.slane %v485_v63, %v501_v1  ;;  %s765_s8 = scalar_lea.vmem [#allocation2], %s1867_s0  ;;  %s1827_s23 = sshll.u32 %s3469_s16, 5 }
  0xdb   : > { %646 = vmatprep.mubr.bf16.mxu0 %v2475_v3  ;;  %699 = vmatprep.mubr.bf16.mxu1 %v2475_v3  ;;  %s1321_s17 = sadd.s32 3, %s1320_s19  ;;  %s1617_s11 = scalar_lea.vmem [#allocation2], %s1827_s23 }
  0xdc   : > { %1045 = vperm.xlu0 %2025, %v1043_v47   ;;  %s1322_s9 = sadd.s32 %s2869_s13, %s1321_s17  ;;  %s1835_s13 = sshll.u32 %s3469_s16, 3 }
  0xdd   : > { %934 = vmatpush1.bf16.msra.mxu0 %v2927_v25  ;;  %975 = vmatpush1.bf16.msra.mxu1 %v2932_v26  ;;  %s1620_s7 = scalar_lea.vmem %s2873_s30, %s1835_s13 [#allocation9]  ;;  %s1868_s21 = sshll.u32 %s3143_s27, 5 }
  0xde   : > { %935 = vmatprep.subr.bf16.mxu0 %v2935_v27  ;;  %976 = vmatprep.subr.bf16.mxu1 %v2940_v28  ;;  %s1191_s1 = scalar_lea.vmem [#allocation2], %s1868_s21  ;;  %s1842_s20 = sshll.u32 %s3143_s27, 3 }
  0xdf   : > { %s1316_s0 = scalar_lea.vmem %s2873_s30, %s1842_s20 [#allocation9]  ;;  %s1869_s27 = sshll.u32 %s2866_s3, 3 }
  0xe0   : > { %1786 = vmatmul.mubr.msk.bf16.gmra.mrb[4].mxu0 %vm597_vm0, %v2064_v29  ;;  %1788 = vmatmul.mubr.msk.bf16.gmra.mrb[4].mxu1 %vm597_vm0, %v2064_v29  ;;  %s1483_s19 = sadd.s32 %s3469_s16, %s1869_s27  ;;  %s1486_s23 = sshll.u32 %s2873_s30, 4  ;;  %s3224_s23 = int_to_ptr.vmem [resolvable:$true] %s1486_s23 }
  0xe1   : > { %936 = vmatpush1.bf16.msra.mxu0 %v2947_v30  ;;  %977 = vmatpush1.bf16.msra.mxu1 %v2952_v31  ;;  %s3473_s20 = sld [smem:[#allocation25_spill]]  ;;  %s1515_s3 = sshll.u32 %s2877_s10, 4  ;;  %s3241_s3 = int_to_ptr.vmem [resolvable:$true] %s1515_s3 }
  0xe2   : > { %937 = vmatprep.subr.bf16.mxu0 %v2957_v32  ;;  %978 = vmatprep.subr.bf16.mxu1 %v2960_v33  ;;  %s3475_s27 = sld [smem:[#allocation37_spill]] }
  0xe3   : > { %963 = vmatprep.mubr.bf16.mxu0 %v2475_v3  ;;  %1004 = vmatprep.mubr.bf16.mxu1 %v2475_v3 }
  0xe4   : > { %1178 = vperm.xlu0 %2025, %v1176_v50  }
  0xe5   : > { %938 = vmatpush1.bf16.msra.mxu0 %v2966_v34  ;;  %979 = vmatpush1.bf16.msra.mxu1 %v2972_v35 }
  0xe6   : > { %939 = vmatprep.subr.bf16.mxu0 %v2975_v36  ;;  %980 = vmatprep.subr.bf16.mxu1 %v2980_v37 }
  0xe7   : > { %p3478_p2 = scmp.ne.s32.totalorder %s3473_s20, 0 }
  0xe9   : > { %940 = vmatpush1.bf16.msra.mxu0 %v2987_v38  ;;  %981 = vmatpush1.bf16.msra.mxu1 %v2992_v39 }
  0xea   : > { %941 = vmatprep.subr.bf16.mxu0 %v2997_v41  ;;  %982 = vmatprep.subr.bf16.mxu1 %v3000_v42 }
  0xed   : > { %942 = vmatpush1.bf16.msra.mxu0 %v3011_v45  ;;  %983 = vmatpush1.bf16.msra.mxu1 %v3014_v46 }
  0xee   : > { %943 = vmatprep.subr.bf16.mxu0 %v3021_v48  ;;  %984 = vmatprep.subr.bf16.mxu1 %v3024_v49 }
  0xf1   : > { %944 = vmatpush1.bf16.msra.mxu0 %v3030_v51  ;;  %985 = vmatpush1.bf16.msra.mxu1 %v3033_v52 }
  0xf2   : > { %945 = vmatprep.subr.bf16.mxu0 %v3038_v53  ;;  %986 = vmatprep.subr.bf16.mxu1 %v3041_v54 }
  0xf5   : > { %946 = vmatpush1.bf16.msra.mxu0 %v3046_v55  ;;  %987 = vmatpush1.bf16.msra.mxu1 %v3049_v56 }
  0xf6   : > { %1064 = vmatprep.subr.bf16.mxu0 %v2903_v18  ;;  %1105 = vmatprep.subr.bf16.mxu1 %v2906_v19 }
  0xf8   : > { %964 = vmatmul.mubr.bf16.vlgmr.msra.gmra.mrb[8].mxu0 %v770_v58  ;;  %1005 = vmatmul.mubr.bf16.vlgmr.msra.gmra.mrb[8].mxu1 %v770_v58 }
  0xf9   : > { %1065 = vmatpush1.bf16.msra.mxu0 %v2911_v21  ;;  %1106 = vmatpush1.bf16.msra.mxu1 %v2914_v22 }
  0xfa   : > { %1066 = vmatprep.subr.bf16.mxu0 %v2917_v23  ;;  %1107 = vmatprep.subr.bf16.mxu1 %v2922_v24 }
  0xfb   : > { %1096 = vmatprep.mubr.bf16.mxu0 %v2475_v3  ;;  %1137 = vmatprep.mubr.bf16.mxu1 %v2475_v3 }
  0xfd   : > { %1067 = vmatpush1.bf16.msra.mxu0 %v2927_v25  ;;  %1108 = vmatpush1.bf16.msra.mxu1 %v2932_v26 }
  0xfe   : > { %1068 = vmatprep.subr.bf16.mxu0 %v2935_v27  ;;  %1109 = vmatprep.subr.bf16.mxu1 %v2940_v28 }
 0x101   : > { %1069 = vmatpush1.bf16.msra.mxu0 %v2947_v30  ;;  %1110 = vmatpush1.bf16.msra.mxu1 %v2952_v31 }
 0x102   : > { %1070 = vmatprep.subr.bf16.mxu0 %v2957_v32  ;;  %1111 = vmatprep.subr.bf16.mxu1 %v2960_v33 }
 0x105   : > { %1071 = vmatpush1.bf16.msra.mxu0 %v2966_v34  ;;  %1112 = vmatpush1.bf16.msra.mxu1 %v2972_v35 }
 0x106   : > { %1072 = vmatprep.subr.bf16.mxu0 %v2975_v36  ;;  %1113 = vmatprep.subr.bf16.mxu1 %v2980_v37 }
 0x109   : > { %1073 = vmatpush1.bf16.msra.mxu0 %v2987_v38  ;;  %1114 = vmatpush1.bf16.msra.mxu1 %v2992_v39 }
 0x10a   : > { %1074 = vmatprep.subr.bf16.mxu0 %v2997_v41  ;;  %1115 = vmatprep.subr.bf16.mxu1 %v3000_v42 }
 0x10d   : > { %1075 = vmatpush1.bf16.msra.mxu0 %v3011_v45  ;;  %1116 = vmatpush1.bf16.msra.mxu1 %v3014_v46 }
 0x10e   : > { %1076 = vmatprep.subr.bf16.mxu0 %v3021_v48  ;;  %1117 = vmatprep.subr.bf16.mxu1 %v3024_v49 }
 0x111   : > { %1077 = vmatpush1.bf16.msra.mxu0 %v3030_v51  ;;  %1118 = vmatpush1.bf16.msra.mxu1 %v3033_v52 }
 0x112   : > { %1078 = vmatprep.subr.bf16.mxu0 %v3038_v53  ;;  %1119 = vmatprep.subr.bf16.mxu1 %v3041_v54 }
 0x115   : > { %1079 = vmatpush1.bf16.msra.mxu0 %v3046_v55  ;;  %1120 = vmatpush1.bf16.msra.mxu1 %v3049_v56 }
 0x116   : > { %1197 = vmatprep.subr.bf16.mxu0 %v2903_v18  ;;  %1238 = vmatprep.subr.bf16.mxu1 %v2906_v19 }
 0x1ab   : > { %v638_v7 = vpop.f32.mrb[0].mxu0  ;;  %v691_v8 = vpop.f32.mrb[0].mxu1 }
 0x1ac   : > { %v639_v9 = vadd.f32 %v638_v7, %v490_v2  ;;  %v640_v10 = vpop.f32.mrb[1].mxu0  ;;  %v692_v11 = vadd.f32 %v691_v8, %v498_v4  ;;  %v693_v12 = vpop.f32.mrb[1].mxu1 }
 0x1ad   : > { %v641_v13 = vadd.f32 %v640_v10, %v494_v5  ;;  %v642_v14 = vpop.f32.mrb[2].mxu0  ;;  %v694_v15 = vadd.f32 %v693_v12, %v502_v6  ;;  %v695_v16 = vpop.f32.mrb[2].mxu1 }
 0x1ae   : > { %710 = vst [vmem:[#allocation2] sm:$0xff] %v639_v9  ;;  %v643_v17 = vadd.f32 %v642_v14, %v490_v2  ;;  %v644_v20 = vpop.f32.mrb[3].mxu0  ;;  %712 = vst [vmem:[#allocation2 + $0x10] sm:$0xff] %v692_v11  ;;  %v696_v29 = vadd.f32 %v695_v16, %v498_v4  ;;  %v697_v40 = vpop.f32.mrb[3].mxu1 }
 0x1af   : > { %711 = vst [vmem:[#allocation2 + $0x8] sm:$0xff] %v641_v13  ;;  %v645_v43 = vadd.f32 %v644_v20, %v494_v5  ;;  %713 = vst [vmem:[#allocation2 + $0x18] sm:$0xff] %v694_v15  ;;  %v698_v47 = vadd.f32 %v697_v40, %v502_v6 }
 0x1b0   : > { %714 = vst [vmem:[#allocation2 + $0x20] sm:$0xff] %v643_v17  ;;  %716 = vst [vmem:[#allocation2 + $0x30] sm:$0xff] %v696_v29 }
 0x1b1   : > { %715 = vst [vmem:[#allocation2 + $0x28] sm:$0xff] %v645_v43  ;;  %717 = vst [vmem:[#allocation2 + $0x38] sm:$0xff] %v698_v47 }
 0x1b3   : > { %v648_v50 = vpop.f32.mrb[4].mxu0  ;;  %v701_v58 = vpop.f32.mrb[4].mxu1 }
 0x1b4   : > { %v649_v59 = vadd.f32 %v648_v50, %v490_v2  ;;  %v702_v60 = vadd.f32 %v701_v58, %v498_v4  ;;  %v650_v61 = vpop.f32.mrb[5].mxu0  ;;  %v703_v62 = vpop.f32.mrb[5].mxu1 }
 0x1b5   : > { %v651_v63 = vadd.f32 %v650_v61, %v494_v5  ;;  %v704_v0 = vadd.f32 %v703_v62, %v502_v6  ;;  %v652_v1 = vpop.f32.mrb[6].mxu0  ;;  %v705_v7 = vpop.f32.mrb[6].mxu1 }
 0x1b6   : > { %718 = vst [vmem:[#allocation2 + $0x40] sm:$0xff] %v649_v59  ;;  %720 = vst [vmem:[#allocation2 + $0x50] sm:$0xff] %v702_v60  ;;  %v653_v8 = vadd.f32 %v652_v1, %v490_v2  ;;  %v706_v9 = vadd.f32 %v705_v7, %v498_v4  ;;  %v654_v10 = vpop.f32.mrb[7].mxu0  ;;  %v707_v11 = vpop.f32.mrb[7].mxu1 }
 0x1b7   : > { %719 = vst [vmem:[#allocation2 + $0x48] sm:$0xff] %v651_v63  ;;  %721 = vst [vmem:[#allocation2 + $0x58] sm:$0xff] %v704_v0  ;;  %v655_v12 = vadd.f32 %v654_v10, %v494_v5  ;;  %v708_v13 = vadd.f32 %v707_v11, %v502_v6  ;;  %v760_v11 = vld [vmem:[%s2877_s10] sm:$0xff] }
 0x1b8   : > { %722 = vst [vmem:[#allocation2 + $0x60] sm:$0xff] %v653_v8  ;;  %724 = vst [vmem:[#allocation2 + $0x70] sm:$0xff] %v706_v9 }
 0x1b9   : > { %723 = vst [vmem:[#allocation2 + $0x68] sm:$0xff] %v655_v12  ;;  %725 = vst [vmem:[#allocation2 + $0x78] sm:$0xff] %v708_v13  ;;  %v1046_v12 = vpop.permute.xlu0 %1045 }
 0x1ba   : > { %vm1047_vm3 = vcmp.eq.s32.totalorder %v1046_v12, 1 }
 0x1c0   : > { %v766_v14 = vld [vmem:[%s765_s8] sm:$0xff]  ;;  %v767_v20 = vld [vmem:[%s765_s8 + $0x8] sm:$0xff]  ;;  %v768_v58 = vld [vmem:[%s765_s8 + $0x10] sm:$0xff] }
 0x1c1   : > { %v769_v60 = vld [vmem:[%s765_s8 + $0x18] sm:$0xff]  ;;  %s1843_s8 = smul.u32 4294967200, %s3469_s16 }
 0x1c2   : > { %v1831_v12 = vld [vmem:[%s1617_s11 + $0x38] sm:$0xff] }
 0x1c3   : > { %s1628_s22 = scalar_lea.vmem [#allocation2], %s1843_s8 }
 0x1cb   : > { %v965_v15 = vpop.f32.mrb[8].mxu0  ;;  %v1006_v16 = vpop.f32.mrb[8].mxu1 }
 0x1cc   : > { %v1013_v17 = vadd.f32 %v965_v15, %v766_v14  ;;  %v967_v29 = vpop.f32.mrb[9].mxu0  ;;  %v1008_v2 = vpop.f32.mrb[9].mxu1  ;;  %v1015_v59 = vadd.f32 %v1006_v16, %v768_v58 }
 0x1cd   : > { %v1014_v4 = vadd.f32 %v967_v29, %v767_v20  ;;  %v969_v40 = vpop.f32.mrb[10].mxu0  ;;  %v1010_v43 = vpop.f32.mrb[10].mxu1  ;;  %v1016_v61 = vadd.f32 %v1008_v2, %v769_v60  ;;  %v1829_v60 = vld [vmem:[%s1617_s11 + $0x28] sm:$0xff] }
 0x1ce   : > { %v1823_v47 = vmul.f32 -1.442695, %v1013_v17  ;;  %v970_v50 = vpop.f32.mrb[11].mxu0  ;;  %v1011_v5 = vpop.f32.mrb[11].mxu1  ;;  %v1825_v62 = vmul.f32 -1.442695, %v1015_v59 }
 0x1cf   : > { %v1824_v6 = vmul.f32 -1.442695, %v1014_v4  ;;  %v1441_v5 = vstv %s1322_s9  ;;  %s1502_s9 = sshll.u32 %s2875_s18, 4  ;;  %s3222_s9 = int_to_ptr.vmem [resolvable:$true] %s1502_s9 }
 0x1d0   : > { %2101 = vpow2.f32 %v1823_v47  ;;  %vm1442_vm5 = vcmp.gt.s32.totalorder %v3005_v44, %v1441_v5  ;;  %v1179_v5 = vpop.permute.xlu0 %1178 }
 0x1d1   : > { %2103 = vpow2.f32 %v1824_v6  ;;  %vm1180_vm6 = vcmp.eq.s32.totalorder %v1179_v5, 1 }
 0x1d2   : > { %2105 = vtanh.f32 %v1016_v61 }
 0x1d3   : > { %2107 = vpow2.f32 %v1825_v62 }
 0x1da   : > { %v2102_v63 = vpop.eup %2101 }
 0x1db   : > { %v1026_v0 = vadd.f32 1.0, %v2102_v63  ;;  %v2104_v1 = vpop.eup %2103 }
 0x1dc   : > { %v1027_v7 = vadd.f32 1.0, %v2104_v1  ;;  %v2106_v8 = vpop.eup %2105 }
 0x1dd   : > { %2109 = vrcp.f32 %v1026_v0  ;;  %v2108_v9 = vpop.eup %2107 }
 0x1de   : > { %2111 = vrcp.f32 %v1027_v7  ;;  %v1028_v15 = vadd.f32 1.0, %v2108_v9 }
 0x1e0   : > { %2113 = vrcp.f32 %v1028_v15 }
 0x1e7   : > { %v2110_v10 = vpop.eup %2109 }
 0x1e8   : > { %v1037_v13 = vmul.f32 %v2110_v10, %v2106_v8  ;;  %v2112_v14 = vpop.eup %2111 }
 0x1e9   : > { %v1036_v16 = vmul.f32 %v2112_v14, %v760_v11 }
 0x1ea   : > { %v2114_v29 = vpop.eup %2113 }
 0x1eb   : > { %v1038_v17 = vadd.f32 %v1037_v13, %v1036_v16 }
 0x1ed   : > { %2115 = vtanh.f32 %v1038_v17  ;;  %v3099_v20 = vsel %vm1047_vm3, %v1038_v17, %v760_v11 }
 0x1f7   : > { %v2116_v2 = vpop.eup %2115 }
 0x1f8   : > { %v1040_v4 = vmul.f32 %v2116_v2, %v2114_v29 }
 0x1fa   : > { %v1048_v40 = vsel %vm1047_vm3, %v1040_v4, 0.0  ;;  %v3104_v43 = vsel %vm1047_vm3, %v1040_v4, %v3052_v57  ;;  %v1307_v57 = vstv %s1188_s5  ;;  %s1860_s5 = sshll.u32 %s3469_s16, 7 }
 0x1fb   : > { %1051 = vst [vmem:[%s1050_s6] sm:$0xff] %v1048_v40  ;;  %v1063_v47 = vpack.c.bf16 %v3104_v43, %v3104_v43  ;;  %vm1308_vm4 = vcmp.gt.s32.totalorder %v3005_v44, %v1307_v57  ;;  %v1830_v44 = vld [vmem:[%s1617_s11 + $0x30] sm:$0xff]  ;;  %s1851_s6 = smul.u32 4294967272, %s3469_s16  ;;  %s2476_s16 = smov [#allocation10]  }
 0x1fc   : > { %v1309_v50 = vsel %vm1308_vm4, 1, %v2475_v3 }
 0x1fd   : > { %1097 = vmatmul.mubr.bf16.vlgmr.msra.gmra.mrb[12].mxu0 %v1063_v47  ;;  %1138 = vmatmul.mubr.bf16.vlgmr.msra.gmra.mrb[12].mxu1 %v1063_v47  ;;  %s1632_s17 = scalar_lea.vmem %s2873_s30, %s1851_s6 [#allocation9]  ;;  %s2259_s30 = sshll.u32 %s2476_s16, 4  ;;  %s2260_s30 = int_to_ptr.vmem [resolvable:$false] %s2259_s30 }
 0x1fe   : > { %1198 = vmatpush1.bf16.msra.mxu0 %v2911_v21  ;;  %1239 = vmatpush1.bf16.msra.mxu1 %v2914_v22  ;;  %p2262_p7 = scmp.lt.s32.totalorder %s3222_s9, %s2260_s30 }
 0x1ff   : > { %1199 = vmatprep.subr.bf16.mxu0 %v2917_v23  ;;  %1240 = vmatprep.subr.bf16.mxu1 %v2922_v24 }
 0x200   : > { %1229 = vmatprep.mubr.bf16.mxu0 %v2475_v3  ;;  %1270 = vmatprep.mubr.bf16.mxu1 %v2475_v3 }
 0x201   : > { %1311 = vperm.xlu1 %2026, %v1309_v50  }
 0x202   : > { %1200 = vmatpush1.bf16.msra.mxu0 %v2927_v25  ;;  %1241 = vmatpush1.bf16.msra.mxu1 %v2932_v26 }
 0x203   : > { %1201 = vmatprep.subr.bf16.mxu0 %v2935_v27  ;;  %1242 = vmatprep.subr.bf16.mxu1 %v2940_v28 }
 0x206   : > { %1202 = vmatpush1.bf16.msra.mxu0 %v2947_v30  ;;  %1243 = vmatpush1.bf16.msra.mxu1 %v2952_v31 }
 0x207   : > { %1203 = vmatprep.subr.bf16.mxu0 %v2957_v32  ;;  %1244 = vmatprep.subr.bf16.mxu1 %v2960_v33 }
 0x20a   : > { %1204 = vmatpush1.bf16.msra.mxu0 %v2966_v34  ;;  %1245 = vmatpush1.bf16.msra.mxu1 %v2972_v35 }
 0x20b   : > { %1205 = vmatprep.subr.bf16.mxu0 %v2975_v36  ;;  %1246 = vmatprep.subr.bf16.mxu1 %v2980_v37 }
 0x20e   : > { %1206 = vmatpush1.bf16.msra.mxu0 %v2987_v38  ;;  %1247 = vmatpush1.bf16.msra.mxu1 %v2992_v39 }
 0x20f   : > { %1207 = vmatprep.subr.bf16.mxu0 %v2997_v41  ;;  %1248 = vmatprep.subr.bf16.mxu1 %v3000_v42 }
 0x212   : > { %1208 = vmatpush1.bf16.msra.mxu0 %v3011_v45  ;;  %1249 = vmatpush1.bf16.msra.mxu1 %v3014_v46 }
 0x213   : > { %1209 = vmatprep.subr.bf16.mxu0 %v3021_v48  ;;  %1250 = vmatprep.subr.bf16.mxu1 %v3024_v49 }
 0x216   : > { %1210 = vmatpush1.bf16.msra.mxu0 %v3030_v51  ;;  %1251 = vmatpush1.bf16.msra.mxu1 %v3033_v52 }
 0x217   : > { %1211 = vmatprep.subr.bf16.mxu0 %v3038_v53  ;;  %1252 = vmatprep.subr.bf16.mxu1 %v3041_v54 }
 0x21a   : > { %1212 = vmatpush1.bf16.msra.mxu0 %v3046_v55  ;;  %1253 = vmatpush1.bf16.msra.mxu1 %v3049_v56 }
 0x21b   : > { %1331 = vmatprep.subr.bf16.mxu0 %v2903_v18  ;;  %1372 = vmatprep.subr.bf16.mxu1 %v2906_v19  ;;  %v1443_v18 = vsel %vm1442_vm5, 1, %v2475_v3  ;;  %v1828_v19 = vld [vmem:[%s1617_s11 + $0x20] sm:$0xff]  ;;  %s3239_s11 = scalar_lea.hbm %s3475_s27, %s1860_s5 }
 0x21c   : > { %1445 = vperm.xlu1 %2026, %v1443_v18  }
 0x2d0   : > { %v1098_v6 = vpop.f32.mrb[12].mxu0  ;;  %v1139_v58 = vpop.f32.mrb[12].mxu1 }
 0x2d1   : > { %v1146_v59 = vadd.f32 %v1828_v19, %v1098_v6  ;;  %v1100_v61 = vpop.f32.mrb[13].mxu0  ;;  %v1141_v62 = vpop.f32.mrb[13].mxu1  ;;  %v1148_v11 = vadd.f32 %v1830_v44, %v1139_v58  ;;  %v1844_v44 = vld [vmem:[%s1628_s22 + $0x60] sm:$0xff] }
 0x2d2   : > { %v1147_v63 = vadd.f32 %v1829_v60, %v1100_v61  ;;  %v1102_v0 = vpop.f32.mrb[14].mxu0  ;;  %v1143_v1 = vpop.f32.mrb[14].mxu1  ;;  %v1149_v13 = vadd.f32 %v1831_v12, %v1141_v62 }
 0x2d3   : > { %v1832_v7 = vmul.f32 -1.442695, %v1146_v59  ;;  %v1103_v8 = vpop.f32.mrb[15].mxu0  ;;  %v1144_v9 = vpop.f32.mrb[15].mxu1  ;;  %v1834_v14 = vmul.f32 -1.442695, %v1148_v11 }
 0x2d4   : > { %v1833_v10 = vmul.f32 -1.442695, %v1147_v63 }
 0x2d5   : > { %2117 = vpow2.f32 %v1832_v7 }
 0x2d6   : > { %2119 = vpow2.f32 %v1833_v10 }
 0x2d7   : > { %2121 = vtanh.f32 %v1149_v13 }
 0x2d8   : > { %2123 = vpow2.f32 %v1834_v14  ;;  %v1845_v14 = vld [vmem:[%s1628_s22 + $0x68] sm:$0xff] }
 0x2df   : > { %v2118_v15 = vpop.eup %2117 }
 0x2e0   : > { %v1159_v16 = vadd.f32 1.0, %v2118_v15  ;;  %v2120_v17 = vpop.eup %2119 }
 0x2e1   : > { %v1160_v29 = vadd.f32 1.0, %v2120_v17  ;;  %v2122_v2 = vpop.eup %2121 }
 0x2e2   : > { %2125 = vrcp.f32 %v1159_v16  ;;  %v2124_v4 = vpop.eup %2123 }
 0x2e3   : > { %2127 = vrcp.f32 %v1160_v29  ;;  %v1161_v50 = vadd.f32 1.0, %v2124_v4 }
 0x2e5   : > { %2129 = vrcp.f32 %v1161_v50  ;;  %v1846_v50 = vld [vmem:[%s1628_s22 + $0x70] sm:$0xff] }
 0x2ec   : > { %v2126_v40 = vpop.eup %2125 }
 0x2ed   : > { %v1170_v47 = vmul.f32 %v2126_v40, %v2122_v2  ;;  %v2128_v57 = vpop.eup %2127 }
 0x2ee   : > { %v1169_v18 = vmul.f32 %v2128_v57, %v3099_v20 }
 0x2ef   : > { %v2130_v58 = vpop.eup %2129 }
 0x2f0   : > { %v1171_v19 = vadd.f32 %v1170_v47, %v1169_v18  ;;  %v1847_v18 = vld [vmem:[%s1628_s22 + $0x78] sm:$0xff] }
 0x2f2   : > { %2131 = vtanh.f32 %v1171_v19  ;;  %v3156_v6 = vsel %vm1180_vm6, %v1171_v19, %v3099_v20 }
 0x2fc   : > { %v2132_v59 = vpop.eup %2131 }
 0x2fd   : > { %v1173_v60 = vmul.f32 %v2132_v59, %v2130_v58 }
 0x2ff   : > { %v3161_v61 = vsel %vm1180_vm6, %v1173_v60, %v3104_v43  ;;  %v1181_v62 = vsel %vm1180_vm6, %v1173_v60, 0.0 }
 0x300   : > { %v1196_v63 = vpack.c.bf16 %v3161_v61, %v3161_v61  ;;  %1836 = vst [vmem:[%s1620_s7 + $0x8] sm:$0xff] %v1181_v62  ;;  %s3472_s7 = sld [smem:[#allocation36_spill]] }
 0x302   : > { %1230 = vmatmul.mubr.bf16.vlgmr.msra.gmra.mrb[16].mxu0 %v1196_v63  ;;  %1271 = vmatmul.mubr.bf16.vlgmr.msra.gmra.mrb[16].mxu1 %v1196_v63 }
 0x303   : > { %1332 = vmatpush1.bf16.msra.mxu0 %v2911_v21  ;;  %1373 = vmatpush1.bf16.msra.mxu1 %v2914_v22 }
 0x304   : > { %1333 = vmatprep.subr.bf16.mxu0 %v2917_v23  ;;  %1374 = vmatprep.subr.bf16.mxu1 %v2922_v24  ;;  %v1193_v24 = vld [vmem:[%s1191_s1 + $0x8] sm:$0xff] }
 0x305   : > { %1363 = vmatprep.mubr.bf16.mxu0 %v2475_v3  ;;  %1404 = vmatprep.mubr.bf16.mxu1 %v2475_v3  ;;  %v1192_v3 = vld [vmem:[%s1191_s1] sm:$0xff] }
 0x306   : > { %s3220_s21 = scalar_lea.hbm %s3472_s7, %s1860_s5 }
 0x307   : > { %1334 = vmatpush1.bf16.msra.mxu0 %v2927_v25  ;;  %1375 = vmatpush1.bf16.msra.mxu1 %v2932_v26 }
 0x308   : > { %1335 = vmatprep.subr.bf16.mxu0 %v2935_v27  ;;  %1376 = vmatprep.subr.bf16.mxu1 %v2940_v28 }
 0x30b   : > { %1336 = vmatpush1.bf16.msra.mxu0 %v2947_v30  ;;  %1377 = vmatpush1.bf16.msra.mxu1 %v2952_v31 }
 0x30c   : > { %1337 = vmatprep.subr.bf16.mxu0 %v2957_v32  ;;  %1378 = vmatprep.subr.bf16.mxu1 %v2960_v33 }
 0x30f   : > { %1338 = vmatpush1.bf16.msra.mxu0 %v2966_v34  ;;  %1379 = vmatpush1.bf16.msra.mxu1 %v2972_v35  ;;  %v1194_v35 = vld [vmem:[%s1191_s1 + $0x10] sm:$0xff] }
 0x310   : > { %1339 = vmatprep.subr.bf16.mxu0 %v2975_v36  ;;  %1380 = vmatprep.subr.bf16.mxu1 %v2980_v37  ;;  %v1195_v37 = vld [vmem:[%s1191_s1 + $0x18] sm:$0xff]  ;;  %s1859_s1 = sshll.u32 %s1483_s19, 7  ;;  %s3476_s19 = smov %s3475_s27 }
 0x313   : > { %1340 = vmatpush1.bf16.msra.mxu0 %v2987_v38  ;;  %1381 = vmatpush1.bf16.msra.mxu1 %v2992_v39 }
 0x314   : > { %1341 = vmatprep.subr.bf16.mxu0 %v2997_v41  ;;  %1382 = vmatprep.subr.bf16.mxu1 %v3000_v42 }
 0x317   : > { %1342 = vmatpush1.bf16.msra.mxu0 %v3011_v45  ;;  %1383 = vmatpush1.bf16.msra.mxu1 %v3014_v46 }
 0x318   : > { %1343 = vmatprep.subr.bf16.mxu0 %v3021_v48  ;;  %1384 = vmatprep.subr.bf16.mxu1 %v3024_v49 }
 0x31b   : > { %1344 = vmatpush1.bf16.msra.mxu0 %v3030_v51  ;;  %1385 = vmatpush1.bf16.msra.mxu1 %v3033_v52  ;;  %v1312_v52 = vpop.permute.xlu1 %1311 }
 0x31c   : > { %1345 = vmatprep.subr.bf16.mxu0 %v3038_v53  ;;  %1386 = vmatprep.subr.bf16.mxu1 %v3041_v54  ;;  %vm1313_vm7 = vcmp.eq.s32.totalorder %v1312_v52, 1 }
 0x31f   : > { %1346 = vmatpush1.bf16.msra.mxu0 %v3046_v55  ;;  %1387 = vmatpush1.bf16.msra.mxu1 %v3049_v56 }
 0x3d5   : > { %v1231_v21 = vpop.f32.mrb[16].mxu0  ;;  %v1272_v22 = vpop.f32.mrb[16].mxu1 }
 0x3d6   : > { %v1279_v23 = vadd.f32 %v1231_v21, %v1192_v3  ;;  %v1233_v25 = vpop.f32.mrb[17].mxu0  ;;  %v1274_v26 = vpop.f32.mrb[17].mxu1  ;;  %v1281_v36 = vadd.f32 %v1272_v22, %v1194_v35 }
 0x3d7   : > { %v1280_v27 = vadd.f32 %v1233_v25, %v1193_v24  ;;  %v1235_v28 = vpop.f32.mrb[18].mxu0  ;;  %v1276_v30 = vpop.f32.mrb[18].mxu1  ;;  %v1282_v38 = vadd.f32 %v1274_v26, %v1195_v37 }
 0x3d8   : > { %v1839_v31 = vmul.f32 -1.442695, %v1279_v23  ;;  %v1236_v32 = vpop.f32.mrb[19].mxu0  ;;  %v1277_v33 = vpop.f32.mrb[19].mxu1  ;;  %v1841_v39 = vmul.f32 -1.442695, %v1281_v36 }
 0x3d9   : > { %v1840_v34 = vmul.f32 -1.442695, %v1280_v27  ;;  %v1446_v24 = vpop.permute.xlu1 %1445 }
 0x3da   : > { %2133 = vpow2.f32 %v1839_v31  ;;  %vm1447_vm8 = vcmp.eq.s32.totalorder %v1446_v24, 1 }
 0x3db   : > { %2135 = vpow2.f32 %v1840_v34 }
 0x3dc   : > { %2137 = vtanh.f32 %v1282_v38 }
 0x3dd   : > { %2139 = vpow2.f32 %v1841_v39 }
 0x3e4   : > { %v2134_v41 = vpop.eup %2133 }
 0x3e5   : > { %v1292_v42 = vadd.f32 1.0, %v2134_v41  ;;  %v2136_v45 = vpop.eup %2135 }
 0x3e6   : > { %v1293_v46 = vadd.f32 1.0, %v2136_v45  ;;  %v2138_v48 = vpop.eup %2137 }
 0x3e7   : > { %2141 = vrcp.f32 %v1292_v42  ;;  %v2140_v49 = vpop.eup %2139 }
 0x3e8   : > { %2143 = vrcp.f32 %v1293_v46  ;;  %v1294_v55 = vadd.f32 1.0, %v2140_v49 }
 0x3ea   : > { %2145 = vrcp.f32 %v1294_v55 }
 0x3f1   : > { %v2142_v51 = vpop.eup %2141 }
 0x3f2   : > { %v1303_v53 = vmul.f32 %v2142_v51, %v2138_v48  ;;  %v2144_v54 = vpop.eup %2143 }
 0x3f3   : > { %v1302_v56 = vmul.f32 %v2144_v54, %v3156_v6 }
 0x3f4   : > { %v2146_v0 = vpop.eup %2145 }
 0x3f5   : > { %v1304_v20 = vadd.f32 %v1303_v53, %v1302_v56 }
 0x3f7   : > { %2147 = vtanh.f32 %v1304_v20  ;;  %v1319_v43 = vsel %vm1313_vm7, %v1304_v20, %v3156_v6 }
 0x401   : > { %v2148_v1 = vpop.eup %2147 }
 0x402   : > { %v1306_v7 = vmul.f32 %v2148_v1, %v2146_v0 }
 0x404   : > { %v1314_v8 = vsel %vm1313_vm7, %v1306_v7, 0.0  ;;  %v3203_v9 = vsel %vm1313_vm7, %v1306_v7, %v3161_v61 }
 0x405   : > { %1317 = vst [vmem:[%s1316_s0] sm:$0xff] %v1314_v8  ;;  %v1330_v10 = vpack.c.bf16 %v3203_v9, %v3203_v9  ;;  %s3474_s0 = sld [smem:[#allocation35_spill]] }
 0x407   : > { %1364 = vmatmul.mubr.bf16.vlgmr.msra.gmra.mrb[20].mxu0 %v1330_v10  ;;  %1405 = vmatmul.mubr.bf16.vlgmr.msra.gmra.mrb[20].mxu1 %v1330_v10 }
 0x40b   : > { %s3230_s8 = scalar_lea.hbm %s3474_s0, %s1859_s1  ;;  %s2255_s1 = scalar_lea.vmem %s3222_s9, 128 }
 0x40c   : > { %p2256_p9 = scmp.ne.s32.totalorder %s3222_s9, %s2255_s1 }
 0x40e   : > { %p2257_p10 = pnand %p2256_p9, %p3478_p2 }
 0x410   : > { %p2258_p13 = pneg %p2257_p10 }
 0x4da   : > { %v1365_v11 = vpop.f32.mrb[20].mxu0  ;;  %v1406_v12 = vpop.f32.mrb[20].mxu1 }
 0x4db   : > { %v1413_v13 = vadd.f32 %v1844_v44, %v1365_v11  ;;  %v1367_v15 = vpop.f32.mrb[21].mxu0  ;;  %v1408_v16 = vpop.f32.mrb[21].mxu1  ;;  %v1415_v5 = vadd.f32 %v1846_v50, %v1406_v12 }
 0x4dc   : > { %v1414_v17 = vadd.f32 %v1845_v14, %v1367_v15  ;;  %v1369_v29 = vpop.f32.mrb[22].mxu0  ;;  %v1410_v2 = vpop.f32.mrb[22].mxu1  ;;  %v1416_v19 = vadd.f32 %v1847_v18, %v1408_v16 }
 0x4dd   : > { %v1848_v4 = vmul.f32 -1.442695, %v1413_v13  ;;  %v1370_v40 = vpop.f32.mrb[23].mxu0  ;;  %v1411_v47 = vpop.f32.mrb[23].mxu1  ;;  %v1850_v6 = vmul.f32 -1.442695, %v1415_v5 }
 0x4de   : > { %v1849_v57 = vmul.f32 -1.442695, %v1414_v17 }
 0x4df   : > { %2149 = vpow2.f32 %v1848_v4 }
 0x4e0   : > { %2151 = vpow2.f32 %v1849_v57 }
 0x4e1   : > { %2153 = vtanh.f32 %v1416_v19 }
 0x4e2   : > { %2155 = vpow2.f32 %v1850_v6 }
 0x4e9   : > { %v2150_v58 = vpop.eup %2149 }
 0x4ea   : > { %v1426_v59 = vadd.f32 1.0, %v2150_v58  ;;  %v2152_v60 = vpop.eup %2151 }
 0x4eb   : > { %v1427_v61 = vadd.f32 1.0, %v2152_v60  ;;  %v2154_v62 = vpop.eup %2153 }
 0x4ec   : > { %2157 = vrcp.f32 %v1426_v59  ;;  %v2156_v63 = vpop.eup %2155 }
 0x4ed   : > { %2159 = vrcp.f32 %v1427_v61  ;;  %v1428_v23 = vadd.f32 1.0, %v2156_v63 }
 0x4ef   : > { %2161 = vrcp.f32 %v1428_v23 }
 0x4f6   : > { %v2158_v3 = vpop.eup %2157 }
 0x4f7   : > { %v1437_v21 = vmul.f32 %v2158_v3, %v2154_v62  ;;  %v2160_v22 = vpop.eup %2159 }
 0x4f8   : > { %v1436_v25 = vmul.f32 %v2160_v22, %v1319_v43 }
 0x4f9   : > { %v2162_v28 = vpop.eup %2161 }
 0x4fa   : > { %v1438_v26 = vadd.f32 %v1437_v21, %v1436_v25 }
 0x4fc   : > { %2163 = vtanh.f32 %v1438_v26  ;;  %v1453_v27 = vsel %vm1447_vm8, %v1438_v26, %v1319_v43 }
 0x4fd   : > { %1455 = vst [vmem:[%s2877_s10] sm:$0xff] %v1453_v27  ;;  %s3477_s10 = sand.u32 1, %s2591_s15  }
 0x4fe   : > { %s3245_s13 = scalar_lea.sflag [#allocation11], %s3477_s10 }
 0x506   : > { %v2164_v30 = vpop.eup %2163 }
 0x507   : > { %v1440_v31 = vmul.f32 %v2164_v30, %v2162_v28 }
 0x509   : > { %v1448_v32 = vsel %vm1447_vm8, %v1440_v31, 0.0  ;;  %v1452_v33 = vsel %vm1447_vm8, %v1440_v31, %v3203_v9 }
 0x50a   : > { %1852 = vst [vmem:[%s1632_s17 + $0x18] sm:$0xff] %v1448_v32  ;;  %1454 = vst [vmem:[%s2875_s18] sm:$0xff] %v1452_v33  ;;  %s2261_s17 = scalar_lea.vmem %s2260_s30, 256 }
 0x50b   : > { %p2263_p1 = scmp.lt.s32.totalorder %s2261_s17, %s2255_s1 }
 0x50d   : > { %p2264_p12 = por %p2263_p1, %p2262_p7 }
 0x50f   : > { %p2265_p4 = pnand %p2264_p12, %p2258_p13 }
 0x511   : > { %2268 = shalt.err (!%p2265_p4)
}
 0x512   : > { %s2269_s15 = scalar_lea.hbm %s3220_s21, 128  ;;  %s2273_s22 = scalar_lea.hbm %s3472_s7, 256 }
 0x513   : > { %p2270_p8 = scmp.ne.s32.totalorder %s3220_s21, %s2269_s15  ;;  %p2274_p11 = scmp.lt.u32.totalorder %s3220_s21, %s3472_s7 }
 0x514   : > { %p2275_p0 = scmp.lt.u32.totalorder %s2273_s22, %s2269_s15  ;;  %p2277_p9 = scmp.lt.u32.totalorder %s2269_s15, %s3220_s21 }
 0x515   : > { %p2271_p5 = pnand %p2270_p8, %p3478_p2 }
 0x516   : > { %p2276_p6 = por %p2275_p0, %p2274_p11 }
 0x517   : > { %p2272_p3 = pneg %p2271_p5 }
 0x518   : > { %p2278_p10 = por %p2277_p9, %p2276_p6 }
 0x51a   : > { %p2279_p13 = pnand %p2278_p10, %p2272_p3 }
 0x51c   : > { %2282 = shalt.err (!%p2279_p13)
}
 0x51d   : > { %1877 = dma.vmem_to_hbm [thread:$0]  (%p3478_p2), %s3222_s9, 128, %s3220_s21, %s3245_s13  }
 0x51e   : > { %s3479_s10 = sand.u32 1, %s2417_s25   ;;  %s2283_s16 = scalar_lea.vmem %s3224_s23, 512 }
 0x51f   : > { %s3271_s1 = scalar_lea.sflag [#allocation5], %s3479_s10  ;;  %p2284_p7 = scmp.ne.s32.totalorder %s3224_s23, %s2283_s16 }
 0x520   : > { %p3480_p1 = scmp.ne.s32.totalorder %s3450_s4, 0  ;;  %s2477_s30 = smov [#allocation9]  }
 0x521   : > { %s2287_s17 = sshll.u32 %s2477_s30, 4  ;;  %s2288_s17 = int_to_ptr.vmem [resolvable:$false] %s2287_s17 }
 0x522   : > { %p2285_p12 = pnand %p2284_p7, %p3480_p1  ;;  %s2289_s15 = scalar_lea.vmem %s2288_s17, 1024 }
 0x523   : > { %p2290_p8 = scmp.lt.s32.totalorder %s3224_s23, %s2288_s17  ;;  %p2291_p5 = scmp.lt.s32.totalorder %s2289_s15, %s2283_s16 }
 0x524   : > { %p2286_p4 = pneg %p2285_p12 }
 0x525   : > { %p2292_p3 = por %p2291_p5, %p2290_p8 }
 0x527   : > { %p2293_p11 = pnand %p2292_p3, %p2286_p4 }
 0x529   : > { %2296 = shalt.err (!%p2293_p11)
}
 0x52a   : > { %s2297_s9 = scalar_lea.hbm %s3230_s8, 512  ;;  %s2301_s5 = scalar_lea.hbm %s3474_s0, 3072 }
 0x52b   : > { %p2298_p0 = scmp.ne.s32.totalorder %s3230_s8, %s2297_s9  ;;  %p2302_p10 = scmp.lt.u32.totalorder %s3230_s8, %s3474_s0 }
 0x52c   : > { %p2303_p13 = scmp.lt.u32.totalorder %s2301_s5, %s2297_s9  ;;  %p2305_p12 = scmp.lt.u32.totalorder %s2297_s9, %s3230_s8 }
 0x52d   : > { %p2299_p6 = pnand %p2298_p0, %p3480_p1 }
 0x52e   : > { %p2304_p7 = por %p2303_p13, %p2302_p10 }
 0x52f   : > { %p2300_p9 = pneg %p2299_p6 }
 0x530   : > { %p2306_p4 = por %p2305_p12, %p2304_p7 }
 0x532   : > { %p2307_p8 = pnand %p2306_p4, %p2300_p9 }
 0x534   : > { %2310 = shalt.err (!%p2307_p8)
}
 0x535   : > { %s2478_s27 = smov 128   ;;  %s2479_s10 = smov 256  }
 0x536   : > { %s2480_s16 = smov 8   ;;  %s2311_s30 = scalar_lea.vmem %s3241_s3, 128 }
 0x537   : > { %1876 = dma.vmem_to_hbm [thread:$0]  (%p3480_p1), %s3224_s23, 512, %s3230_s8, %s3271_s1, %s2478_s27, %s2479_s10, %s2480_s16  }
 0x538   : > { %p2312_p5 = scmp.ne.s32.totalorder %s3241_s3, %s2311_s30  ;;  %s2481_s17 = smov [#allocation12]  }
 0x539   : > { %s2315_s15 = sshll.u32 %s2481_s17, 4  ;;  %s2316_s15 = int_to_ptr.vmem [resolvable:$false] %s2315_s15 }
 0x53a   : > { %p2313_p3 = pnand %p2312_p5, %p3478_p2  ;;  %s2317_s9 = scalar_lea.vmem %s2316_s15, 256 }
 0x53b   : > { %p2318_p0 = scmp.lt.s32.totalorder %s3241_s3, %s2316_s15  ;;  %p2319_p6 = scmp.lt.s32.totalorder %s2317_s9, %s2311_s30 }
 0x53c   : > { %p2314_p11 = pneg %p2313_p3 }
 0x53d   : > { %p2320_p9 = por %p2319_p6, %p2318_p0 }
 0x53f   : > { %p2321_p10 = pnand %p2320_p9, %p2314_p11 }
 0x541   : > { %2324 = shalt.err (!%p2321_p10)
}
 0x542   : > { %s2325_s4 = scalar_lea.hbm %s3239_s11, 128  ;;  %s2329_s1 = scalar_lea.hbm %s3476_s19, 256 }
 0x543   : > { %p2326_p1 = scmp.ne.s32.totalorder %s3239_s11, %s2325_s4  ;;  %p2330_p12 = scmp.lt.u32.totalorder %s3239_s11, %s3476_s19 }
 0x544   : > { %p2331_p4 = scmp.lt.u32.totalorder %s2329_s1, %s2325_s4  ;;  %p2333_p5 = scmp.lt.u32.totalorder %s2325_s4, %s3239_s11 }
 0x545   : > { %p2327_p13 = pnand %p2326_p1, %p3478_p2 }
 0x546   : > { %p2332_p8 = por %p2331_p4, %p2330_p12 }
 0x547   : > { %p2328_p7 = pneg %p2327_p13 }
 0x548   : > { %p2334_p3 = por %p2333_p5, %p2332_p8 }
 0x54a   : > { %p2335_p11 = pnand %p2334_p3, %p2328_p7 }
 0x54c   : > { %2338 = shalt.err (!%p2335_p11)
}
 0x54d   : > { %1878 = dma.vmem_to_hbm [thread:$0]  (%p3478_p2), %s3241_s3, 128, %s3239_s11, %s3245_s13  }
 0x54e PF: > { %p1903_p0 = scmp.ge.s32.totalorder %s2465_s14, 2  ;;  %s1527_s5 = sand.u32 1, %s2413_s24  }
 0x54f   : > { %p3481_p6 = scmp.ne.s32.totalorder %s3451_s12, 0  ;;  %s1528_s22 = scalar_lea.sflag [#allocation5], %s1527_s5 }
 0x551   : > { %p1893_p9 = pnand %p1903_p0, %p3481_p6 }
 0x553   : > { %2404 = dma.done.wait (!%p1893_p9), %s1528_s22, 512  }
 0x554   : > { %2406 = vsyncadd (!%p1893_p9), %s1528_s22, 4294966784  ;;  %s3482_s6 = sadd.s32 4294967294, %s2465_s14   ;;  %s3483_s27 = sld [smem:[#allocation26_spill]] }
 0x555   : > { %s1536_s10 = sand.u32 1, %s3482_s6  }
 0x556   : > { %s1537_s20 = scalar_lea.sflag [#allocation11], %s1536_s10 }
 0x55a   : > { %p3484_p10 = scmp.ne.s32.totalorder %s3483_s27, 0 }
 0x55c   : > { %p1896_p1 = pnand %p1903_p0, %p3484_p10 }
 0x55e   : > { %2408 = dma.done.wait (!%p1896_p1), %s1537_s20, 256  }
 0x55f   : > { %2410 = vsyncadd (!%p1896_p1), %s1537_s20, 4294967040  ;;  %s30_s14 = sadd.s32 1, %s2465_s14   ;;  %s3486_s27 = sld [smem:[#allocation17_spill]] }
 0x560   : > { %p3326_p2 = scmp.ge.s32.totalorder %s30_s14, 8   ;;  %s3487_s12 = smov %s2731_s28 }
 0x561   : > { %s3488_s30 = sld [smem:[#allocation18_spill]]  ;;  %s3489_s8 = sld [smem:[#allocation19_spill]] }
 0x562   : > { %s3490_s9 = sld [smem:[#allocation29_spill]]  ;;  %s3491_s10 = sld [smem:[#allocation22_spill]] }
 0x563   : > { %s3492_s11 = sld [smem:[#allocation23_spill]]  ;;  %s3493_s13 = sld [smem:[#allocation27_spill]] }
 0x564   : > { %s3494_s16 = sld [smem:[#allocation28_spill]]  ;;  %s3495_s24 = smov %s2417_s25 }
 0x565   : > { %s3496_s25 = smov %s2421_s26  ;;  %s3497_s26 = smov %s2746_s2 }
 0x566   : > { %s3498_s28 = smov %s2433_s29  ;;  %s3499_s29 = smov %s3487_s12 }
 0x567   :  { %29 = sbr.rel (!%p3326_p2) target bundleno = 23 (0x17), region = 156 }
 0x569   : > { %s3500_s12 = smov %s3493_s13 }
 0x56a   : > { %s3501_s13 = smov %s3494_s16 }
 0x56e   :  { %1551 = vsyncpa [#allocation4], 1 }
 0x56f   :  { %1553 = vsyncpa [#allocation4 + $0x1], 1 }
 0x570   :  { %1554 = vsyncpa [#allocation7], 1 }
 0x571   :  { %1556 = vsyncpa [#allocation7 + $0x1], 1 }
 0x572   :  { %1557 = vsyncpa [#allocation5], 1 }
 0x573   :  { %1559 = vsyncpa [#allocation5 + $0x1], 1 }
 0x574   :  { %1560 = vsyncpa [#allocation11], 1 }
 0x575   :  { %1562 = vsyncpa [#allocation11 + $0x1], 1 }

</bundles_post_ra>
